<compile_context>
chip_gen: v7x
topology: tpu7x:2x2x1
jax: 0.10.0
libtpu: 0.0.40
codegen_flags: <defaults>
</compile_context>

<pallas_src>
import functools

import jax
import jax.numpy as jnp
import numpy as np
from jax.experimental import pallas as pl
from jax.experimental.pallas import tpu as pltpu

NEG_SLOPE = 0.2
MASK_NEG = -1e30


def _gat_layer(x_bf, mask_bias, wf, bias, *, heads, ch, concat):
    """Dense, multi-graph (block-diagonal) GATConv layer. Pure jnp, used both
    inside the Pallas kernel and as the matched-precision reference.

    x_bf:      [NP, F]          bf16 packed node features (G graphs stacked)
    mask_bias: [NP, NP]         f32 additive adjacency mask (0 edge, -1e30 off)
    wf:        [F, H*C + 2*H]   bf16 fused [W | W@a_src_bd | W@a_dst_bd]
    bias:      [1, H*C] or [1, C]  f32
    """
    hc = heads * ch
    # one matmul -> projected features AND both per-head src/dst scores
    xps = jnp.dot(x_bf, wf, preferred_element_type=jnp.float32)     # [NP, HC+2H]
    xp = xps[:, :hc]                                                 # [NP, H*C]
    a_src = xps[:, hc:hc + heads]                                    # [NP, H]
    a_dst = xps[:, hc + heads:]                                      # [NP, H]

    # stacked per-head scores: e[h, i, j] = a_dst[i, h] + a_src[j, h]
    e = a_dst.T[:, :, None] + a_src.T[:, None, :]                    # [H, NP, NP]
    e = jnp.maximum(e, NEG_SLOPE * e)                                # LeakyReLU(0.2)
    e = e + mask_bias[None, :, :]                                    # additive mask
    m = jnp.max(e, axis=-1, keepdims=True)
    p = jnp.exp(e - m)                                               # unnormalized attn
    l = jnp.sum(p, axis=-1, keepdims=True)                           # [H, NP, 1]

    p_bf = p.astype(jnp.bfloat16)
    xp_bf = xp.astype(jnp.bfloat16)
    outs = []
    for h in range(heads):
        o = jnp.dot(p_bf[h], xp_bf[:, h * ch:(h + 1) * ch],
                    preferred_element_type=jnp.float32)              # [NP, C]
        # deferred softmax normalization: scale the small [NP, C] result
        # instead of dividing the [NP, NP] attention matrix.
        outs.append(o / l[h])
    if concat:
        out = jnp.concatenate(outs, axis=-1)
    elif heads == 1:
        out = outs[0]
    else:
        out = sum(outs) / heads
    return out + bias


def _decode_packed(z, sd_bf, *, e_out):
    """Edge scores for the packed step, lane-dense: returns [1, e_out]."""
    zT = z.T.astype(jnp.bfloat16)                                    # [C2, NP]
    zsd = jnp.dot(zT, sd_bf, preferred_element_type=jnp.float32)     # [C2, 2*e_out]
    return jnp.sum(zsd[:, :e_out] * zsd[:, e_out:], axis=0, keepdims=True)


def gaae_kernel(x_ref, mask_ref, sd_ref, w1_ref, b1_ref, w2_ref, b2_ref, out_ref,
                *, h1, c1, c2, e_out):
    x = x_ref[0]                                                     # [NP, F] bf16
    mask_bias = mask_ref[0].astype(jnp.float32)                      # cast once, reused
    # encode: conv1 (heads=2, concat) -> relu -> conv2 (heads=1, mean)
    y = _gat_layer(x, mask_bias, w1_ref[...], b1_ref[...],
                   heads=h1, ch=c1, concat=True)
    y = jnp.maximum(y, 0.0)
    z = _gat_layer(y.astype(jnp.bfloat16), mask_bias, w2_ref[...], b2_ref[...],
                   heads=1, ch=c2, concat=False)
    # decode: one bf16 matmul against the concatenated src|dst one-hots.
    # Padded edge columns have all-zero one-hots -> score 0.
    out_ref[0] = _decode_packed(z, sd_ref[0], e_out=e_out)


def gaae_pallas(x, mask_bias, sd, w1f, b1, w2f, b2, *, heads1, c1, c2, e_out):
    S, NP, F = x.shape
    assert sd.shape == (S, NP, 2 * e_out)

    kernel = functools.partial(gaae_kernel, h1=heads1, c1=c1, c2=c2, e_out=e_out)

    def per_step(shape):
        nd = len(shape)
        return pl.BlockSpec((1,) + tuple(shape),
                            lambda s, _nd=nd: (s,) + (0,) * _nd)

    def shared(a):
        nd = a.ndim
        return pl.BlockSpec(a.shape, lambda s, _nd=nd: (0,) * _nd)

    def nbytes(shape, dtype):
        return int(np.prod(shape)) * jnp.dtype(dtype).itemsize

    # derived VMEM budget: double-buffered I/O blocks + stacked f32 score /
    # softmax intermediates + headroom for compiler scratch.
    block_bytes = (nbytes((NP, F), x.dtype) + nbytes((NP, NP), mask_bias.dtype)
                   + nbytes((NP, 2 * e_out), sd.dtype)
                   + nbytes(w1f.shape, w1f.dtype) + nbytes(b1.shape, b1.dtype)
                   + nbytes(w2f.shape, w2f.dtype) + nbytes(b2.shape, b2.dtype)
                   + nbytes((1, e_out), jnp.float32))
    vmem_limit = int(2 * block_bytes + 6 * (heads1 + 1) * NP * NP * 4 + (4 << 20))

    hc1 = heads1 * c1
    f2 = hc1
    flops = 2 * S * (NP * F * (hc1 + 2 * heads1)     # conv1 fused lin + scores
                     + heads1 * NP * NP * c1         # conv1 aggregation
                     + NP * f2 * (c2 + 2)            # conv2 fused lin + scores
                     + NP * NP * c2                  # conv2 aggregation
                     + c2 * NP * 2 * e_out)          # decoder gather matmul
    transcendentals = S * (heads1 + 1) * NP * NP     # exp count
    bytes_accessed = int(S * block_bytes)

    out = pl.pallas_call(
        kernel,
        out_shape=jax.ShapeDtypeStruct((S, 1, e_out), jnp.float32),
        grid=(S,),
        in_specs=[
            per_step((NP, F)),              # packed node features     (bf16)
            per_step((NP, NP)),             # block-diag additive mask (bf16)
            per_step((NP, 2 * e_out)),      # concat src|dst one-hots  (bf16)
            shared(w1f), shared(b1),
            shared(w2f), shared(b2),
        ],
        out_specs=pl.BlockSpec((1, 1, e_out), lambda s: (s, 0, 0)),
        compiler_params=pltpu.CompilerParams(
            dimension_semantics=("parallel",),     # packed steps are independent
            vmem_limit_bytes=vmem_limit),
        cost_estimate=pl.CostEstimate(flops=int(flops),
                                      transcendentals=int(transcendentals),
                                      bytes_accessed=bytes_accessed),
    )(x, mask_bias, sd, w1f, b1, w2f, b2)
    return out.reshape(S, e_out)


def block_diag_att(att):
    """[H, C] attention vectors -> [H*C, H] block-diagonal matrix so that
    (x @ W) @ att_mat gives per-head attention scalars."""
    H, C = att.shape
    m = np.zeros((H * C, H), np.float32)
    a = np.asarray(att)
    for h in range(H):
        m[h * C:(h + 1) * C, h] = a[h]
    return jnp.asarray(m)


def gaae_forward_packed(x_bf, mask_bf, sd_bf, w1f, b1, w2f, b2, *, h1, c1, c2, e_out):
    """Plain-JAX matched-precision reference of the packed kernel math."""
    mask = mask_bf.astype(jnp.float32)
    y = _gat_layer(x_bf, mask, w1f, b1, heads=h1, ch=c1, concat=True)
    y = jnp.maximum(y, 0.0)
    z = _gat_layer(y.astype(jnp.bfloat16), mask, w2f, b2, heads=1, ch=c2, concat=False)
    return _decode_packed(z, sd_bf, e_out=e_out)[0]                  # [e_out]


def _gat_layer_ref_f32(x, adj, w, att_src, att_dst, bias, *, heads, ch, concat):
    """Original (per-graph, full f32) GATConv math."""
    xp = x @ w                                                        # [N, H*C]
    xph = xp.reshape(x.shape[0], heads, ch)
    a_src = jnp.einsum('nhc,hc->nh', xph, att_src)
    a_dst = jnp.einsum('nhc,hc->nh', xph, att_dst)
    outs = []
    for h in range(heads):
        e = a_dst[:, h][:, None] + a_src[:, h][None, :]               # rows=dst, cols=src
        e = jnp.where(e > 0, e, NEG_SLOPE * e)
        e = jnp.where(adj > 0, e, MASK_NEG)
        e = e - jnp.max(e, axis=-1, keepdims=True)
        p = jnp.exp(e)
        attn = p / jnp.sum(p, axis=-1, keepdims=True)
        outs.append(attn @ xph[:, h, :])
    out = jnp.concatenate(outs, -1) if concat else sum(outs) / heads
    return out + bias


def gaae_ref_f32(x, adj, src, dst, w1, as1, ad1, b1, w2, as2, ad2, b2, *, h1, c1, c2):
    y = _gat_layer_ref_f32(x, adj, w1, as1, ad1, b1, heads=h1, ch=c1, concat=True)
    y = jnp.maximum(y, 0.0)
    z = _gat_layer_ref_f32(y, adj, w2, as2, ad2, b2, heads=1, ch=c2, concat=False)
    return jnp.sum(z[src] * z[dst], axis=-1)                          # [E]


if __name__ == "__main__":
    B = 16                      # total graphs
    G = 8                       # graphs packed per grid step
    S = B // G                  # grid steps (>= 2 so both v7x TCs get work)
    N = 16                      # nodes per graph
    NP = G * N                  # 128 packed nodes per step (full sublane tile)
    in_channels = 8
    out_channels = 8
    E = 24                      # edges per graph
    H1 = 2
    C1 = 2 * out_channels       # 16 per-head channels of conv1
    F2 = H1 * C1                # 32 = 4*out_channels (input of conv2)
    C2 = out_channels           # 8
    EO = ((G * E + 127) // 128) * 128   # 256: lane-dense decoder width per step

    key = jax.random.PRNGKey(0)
    (k_x, k_w1, k_as1, k_ad1, k_b1, k_w2, k_as2, k_ad2, k_b2, k_e) = jax.random.split(key, 10)
    edge_keys = jax.random.split(k_e, B)

    x_all = jax.random.normal(k_x, (B, N, in_channels), jnp.float32)
    w1 = 0.2 * jax.random.normal(k_w1, (in_channels, H1 * C1), jnp.float32)
    att_src1 = 0.2 * jax.random.normal(k_as1, (H1, C1), jnp.float32)
    att_dst1 = 0.2 * jax.random.normal(k_ad1, (H1, C1), jnp.float32)
    b1 = 0.1 * jax.random.normal(k_b1, (1, H1 * C1), jnp.float32)
    w2 = 0.2 * jax.random.normal(k_w2, (F2, C2), jnp.float32)
    att_src2 = 0.2 * jax.random.normal(k_as2, (1, C2), jnp.float32)
    att_dst2 = 0.2 * jax.random.normal(k_ad2, (1, C2), jnp.float32)
    b2 = 0.1 * jax.random.normal(k_b2, (1, C2), jnp.float32)

    # fused weights [W | W@a_src_bd | W@a_dst_bd]: pre-folds the attention-score
    # projection, removing the dependent xp->scores matmul from the kernel.
    ac1 = jnp.concatenate([block_diag_att(att_src1), block_diag_att(att_dst1)], axis=1)  # [32, 4]
    ac2 = jnp.concatenate([block_diag_att(att_src2), block_diag_att(att_dst2)], axis=1)  # [8, 2]
    w1f = jnp.concatenate([w1, w1 @ ac1], axis=1).astype(jnp.bfloat16)   # [8, 36]
    w2f = jnp.concatenate([w2, w2 @ ac2], axis=1).astype(jnp.bfloat16)   # [32, 10]

    # per-graph random (duplicate-free) edges -> packed block-diagonal additive
    # mask and concatenated src|dst one-hot gather matrices.
    adj_np = np.zeros((B, N, N), np.float32)
    src_np = np.zeros((B, E), np.int64)
    dst_np = np.zeros((B, E), np.int64)
    mask_np = np.full((S, NP, NP), MASK_NEG, np.float32)
    sd_np = np.zeros((S, NP, 2 * EO), np.float32)
    for b in range(B):
        s, g = divmod(b, G)
        pair = np.asarray(jax.random.permutation(edge_keys[b], N * N))[:E]
        src = (pair // N).astype(np.int64)
        dst = (pair % N).astype(np.int64)
        src_np[b], dst_np[b] = src, dst
        adj = np.zeros((N, N), np.float32)
        adj[dst, src] = 1.0                         # message j(src) -> i(dst)
        adj[np.arange(N), np.arange(N)] = 1.0       # add_self_loops=True
        adj_np[b] = adj
        base = g * N
        mask_np[s, base:base + N, base:base + N] = np.where(adj > 0, 0.0, MASK_NEG)
        cols = g * E + np.arange(E)
        sd_np[s, base + src, cols] = 1.0            # src one-hots -> cols [0, EO)
        sd_np[s, base + dst, EO + cols] = 1.0       # dst one-hots -> cols [EO, 2*EO)

    x_p = jnp.asarray(np.asarray(x_all).reshape(S, NP, in_channels), jnp.bfloat16)
    mask_p = jnp.asarray(mask_np, jnp.bfloat16)     # -1e30 stays finite in bf16
    sd_p = jnp.asarray(sd_np, jnp.bfloat16)         # 0/1 exact in bf16

    out = gaae_pallas(x_p, mask_p, sd_p, w1f, b1, w2f, b2,
                      heads1=H1, c1=C1, c2=C2, e_out=EO)
    out = np.asarray(jax.block_until_ready(out))    # (S, EO)

    # matched-precision packed reference (tight) and original per-graph full-f32
    # reference (loose, bf16-level tolerance).
    ref_m = np.asarray(jax.block_until_ready(jnp.stack([
        gaae_forward_packed(x_p[s], mask_p[s], sd_p[s], w1f, b1, w2f, b2,
                            h1=H1, c1=C1, c2=C2, e_out=EO) for s in range(S)])))

    got = np.zeros((B, E), np.float32)
    exp_m = np.zeros((B, E), np.float32)
    ref_f = np.zeros((B, E), np.float32)
    for b in range(B):
        s, g = divmod(b, G)
        got[b] = out[s, g * E:(g + 1) * E]
        exp_m[b] = ref_m[s, g * E:(g + 1) * E]
        ref_f[b] = np.asarray(jax.block_until_ready(gaae_ref_f32(
            x_all[b], jnp.asarray(adj_np[b]), src_np[b], dst_np[b],
            w1, att_src1, att_dst1, b1, w2, att_src2, att_dst2, b2,
            h1=H1, c1=C1, c2=C2)))

    assert got.shape == (B, E)
    assert np.allclose(got, exp_m, rtol=1e-3, atol=1e-3), \
        float(np.max(np.abs(got - exp_m)))
    assert np.allclose(got, ref_f, rtol=5e-2, atol=5e-2), \
        float(np.max(np.abs(got - ref_f)))
    print("KERNEL_OK")
</pallas_src>

<mosaic_0001>
module attributes {stable_mosaic.version = 11 : i64} {
  func.func @gaae_kernel(%arg0: i32, %arg1: memref<1x128x8xbf16, #tpu.memory_space<vmem>>, %arg2: memref<1x128x128xbf16, #tpu.memory_space<vmem>>, %arg3: memref<1x128x512xbf16, #tpu.memory_space<vmem>>, %arg4: memref<8x36xbf16, #tpu.memory_space<vmem>>, %arg5: memref<1x32xf32, #tpu.memory_space<vmem>>, %arg6: memref<32x10xbf16, #tpu.memory_space<vmem>>, %arg7: memref<1x8xf32, #tpu.memory_space<vmem>>, %arg8: memref<1x1x256xf32, #tpu.memory_space<vmem>>) attributes {dimension_semantics = [#tpu.dimension_semantics<parallel>], iteration_bounds = array<i64: 2>, scalar_prefetch = 0 : i64, scratch_operands = 0 : i64, tpu.core_type = #tpu.core_type<tc>, window_params = [{transform_indices = @transform_0, window_bounds = array<i64: 1, 128, 8>}, {transform_indices = @transform_1, window_bounds = array<i64: 1, 128, 128>}, {transform_indices = @transform_2, window_bounds = array<i64: 1, 128, 512>}, {pipeline_mode = #tpu.pipeline_mode<synchronous>, transform_indices = @transform_3, window_bounds = array<i64: 8, 36>}, {pipeline_mode = #tpu.pipeline_mode<synchronous>, transform_indices = @transform_4, window_bounds = array<i64: 1, 32>}, {pipeline_mode = #tpu.pipeline_mode<synchronous>, transform_indices = @transform_5, window_bounds = array<i64: 32, 10>}, {pipeline_mode = #tpu.pipeline_mode<synchronous>, transform_indices = @transform_6, window_bounds = array<i64: 1, 8>}, {transform_indices = @transform_7, window_bounds = array<i64: 1, 1, 256>}]} {
    %c0 = arith.constant 0 : index
    %c0_0 = arith.constant 0 : index
    %c0_1 = arith.constant 0 : index
    %0 = vector.load %arg1[%c0, %c0_0, %c0_1] : memref<1x128x8xbf16, #tpu.memory_space<vmem>>, vector<1x128x8xbf16>
    %1 = vector.shape_cast %0 : vector<1x128x8xbf16> to vector<128x8xbf16>
    %c0_2 = arith.constant 0 : index
    %c0_3 = arith.constant 0 : index
    %c0_4 = arith.constant 0 : index
    %2 = vector.load %arg2[%c0_2, %c0_3, %c0_4] : memref<1x128x128xbf16, #tpu.memory_space<vmem>>, vector<1x128x128xbf16>
    %3 = vector.shape_cast %2 : vector<1x128x128xbf16> to vector<128x128xbf16>
    %4 = arith.extf %3 : vector<128x128xbf16> to vector<128x128xf32>
    %c0_5 = arith.constant 0 : index
    %c0_6 = arith.constant 0 : index
    %5 = vector.load %arg4[%c0_5, %c0_6] : memref<8x36xbf16, #tpu.memory_space<vmem>>, vector<8x36xbf16>
    %c0_7 = arith.constant 0 : index
    %c0_8 = arith.constant 0 : index
    %6 = vector.load %arg5[%c0_7, %c0_8] : memref<1x32xf32, #tpu.memory_space<vmem>>, vector<1x32xf32>
    %cst = arith.constant dense<0.000000e+00> : vector<128x36xf32>
    %7 = tpu.matmul %1, %5, %cst {dimension_numbers = #tpu.dot_dimension_numbers<[1], [0], [0], [1], [0, 0, 1, 1], [], []>} : vector<128x8xbf16>, vector<8x36xbf16>, vector<128x36xf32> -> vector<128x36xf32>
    %8 = vector.extract_strided_slice %7 {offsets = [0, 0], sizes = [128, 32], strides = [1, 1]} : vector<128x36xf32> to vector<128x32xf32>
    %9 = vector.extract_strided_slice %7 {offsets = [0, 32], sizes = [128, 2], strides = [1, 1]} : vector<128x36xf32> to vector<128x2xf32>
    %10 = vector.extract_strided_slice %7 {offsets = [0, 34], sizes = [128, 2], strides = [1, 1]} : vector<128x36xf32> to vector<128x2xf32>
    %11 = tpu.transpose %10, [1, 0] : vector<128x2xf32> -> vector<2x128xf32>
    %12 = vector.shape_cast %11 : vector<2x128xf32> to vector<2x128x1xf32>
    %13 = tpu.transpose %9, [1, 0] : vector<128x2xf32> -> vector<2x128xf32>
    %14 = vector.shape_cast %13 : vector<2x128xf32> to vector<2x1x128xf32>
    %15 = vector.broadcast %12 : vector<2x128x1xf32> to vector<2x128x128xf32>
    %16 = vector.broadcast %14 : vector<2x1x128xf32> to vector<2x128x128xf32>
    %17 = arith.addf %15, %16 : vector<2x128x128xf32>
    %cst_9 = arith.constant 2.000000e-01 : f32
    %18 = vector.broadcast %cst_9 : f32 to vector<2x128x128xf32>
    %19 = arith.mulf %18, %17 : vector<2x128x128xf32>
    %20 = arith.maximumf %17, %19 : vector<2x128x128xf32>
    %21 = vector.shape_cast %4 : vector<128x128xf32> to vector<1x128x128xf32>
    %22 = vector.broadcast %21 : vector<1x128x128xf32> to vector<2x128x128xf32>
    %23 = arith.addf %20, %22 : vector<2x128x128xf32>
    %cst_10 = arith.constant dense<0xFF800000> : vector<2x128xf32>
    %24 = vector.multi_reduction <maximumf>, %23, %cst_10 [2] : vector<2x128x128xf32> to vector<2x128xf32>
    %25 = vector.shape_cast %24 : vector<2x128xf32> to vector<2x128x1xf32>
    %26 = vector.broadcast %25 : vector<2x128x1xf32> to vector<2x128x128xf32>
    %27 = arith.subf %23, %26 : vector<2x128x128xf32>
    %28 = math.exp %27 : vector<2x128x128xf32>
    %cst_11 = arith.constant dense<0.000000e+00> : vector<2x128xf32>
    %29 = vector.multi_reduction <add>, %28, %cst_11 [2] : vector<2x128x128xf32> to vector<2x128xf32>
    %30 = vector.shape_cast %29 : vector<2x128xf32> to vector<2x128x1xf32>
    %31 = arith.truncf %28 : vector<2x128x128xf32> to vector<2x128x128xbf16>
    %32 = arith.truncf %8 : vector<128x32xf32> to vector<128x32xbf16>
    %33 = vector.extract_strided_slice %31 {offsets = [0, 0, 0], sizes = [1, 128, 128], strides = [1, 1, 1]} : vector<2x128x128xbf16> to vector<1x128x128xbf16>
    %34 = vector.shape_cast %33 : vector<1x128x128xbf16> to vector<128x128xbf16>
    %35 = vector.extract_strided_slice %32 {offsets = [0, 0], sizes = [128, 16], strides = [1, 1]} : vector<128x32xbf16> to vector<128x16xbf16>
    %cst_12 = arith.constant dense<0.000000e+00> : vector<128x16xf32>
    %36 = tpu.matmul %34, %35, %cst_12 {dimension_numbers = #tpu.dot_dimension_numbers<[1], [0], [0], [1], [0, 0, 1, 1], [], []>} : vector<128x128xbf16>, vector<128x16xbf16>, vector<128x16xf32> -> vector<128x16xf32>
    %37 = vector.extract_strided_slice %30 {offsets = [0, 0, 0], sizes = [1, 128, 1], strides = [1, 1, 1]} : vector<2x128x1xf32> to vector<1x128x1xf32>
    %38 = vector.shape_cast %37 : vector<1x128x1xf32> to vector<128x1xf32>
    %39 = vector.broadcast %38 : vector<128x1xf32> to vector<128x16xf32>
    %40 = arith.divf %36, %39 : vector<128x16xf32>
    %41 = vector.extract_strided_slice %31 {offsets = [1, 0, 0], sizes = [1, 128, 128], strides = [1, 1, 1]} : vector<2x128x128xbf16> to vector<1x128x128xbf16>
    %42 = vector.shape_cast %41 : vector<1x128x128xbf16> to vector<128x128xbf16>
    %43 = vector.extract_strided_slice %32 {offsets = [0, 16], sizes = [128, 16], strides = [1, 1]} : vector<128x32xbf16> to vector<128x16xbf16>
    %cst_13 = arith.constant dense<0.000000e+00> : vector<128x16xf32>
    %44 = tpu.matmul %42, %43, %cst_13 {dimension_numbers = #tpu.dot_dimension_numbers<[1], [0], [0], [1], [0, 0, 1, 1], [], []>} : vector<128x128xbf16>, vector<128x16xbf16>, vector<128x16xf32> -> vector<128x16xf32>
    %45 = vector.extract_strided_slice %30 {offsets = [1, 0, 0], sizes = [1, 128, 1], strides = [1, 1, 1]} : vector<2x128x1xf32> to vector<1x128x1xf32>
    %46 = vector.shape_cast %45 : vector<1x128x1xf32> to vector<128x1xf32>
    %47 = vector.broadcast %46 : vector<128x1xf32> to vector<128x16xf32>
    %48 = arith.divf %44, %47 : vector<128x16xf32>
    %49 = tpu.concatenate %40, %48 in 1 : vector<128x16xf32>, vector<128x16xf32> -> vector<128x32xf32>
    %50 = vector.broadcast %6 : vector<1x32xf32> to vector<128x32xf32>
    %51 = arith.addf %49, %50 : vector<128x32xf32>
    %cst_14 = arith.constant 0.000000e+00 : f32
    %52 = vector.broadcast %cst_14 : f32 to vector<128x32xf32>
    %53 = arith.maximumf %51, %52 : vector<128x32xf32>
    %54 = arith.truncf %53 : vector<128x32xf32> to vector<128x32xbf16>
    %c0_15 = arith.constant 0 : index
    %c0_16 = arith.constant 0 : index
    %55 = vector.load %arg6[%c0_15, %c0_16] : memref<32x10xbf16, #tpu.memory_space<vmem>>, vector<32x10xbf16>
    %c0_17 = arith.constant 0 : index
    %c0_18 = arith.constant 0 : index
    %56 = vector.load %arg7[%c0_17, %c0_18] : memref<1x8xf32, #tpu.memory_space<vmem>>, vector<1x8xf32>
    %cst_19 = arith.constant dense<0.000000e+00> : vector<128x10xf32>
    %57 = tpu.matmul %54, %55, %cst_19 {dimension_numbers = #tpu.dot_dimension_numbers<[1], [0], [0], [1], [0, 0, 1, 1], [], []>} : vector<128x32xbf16>, vector<32x10xbf16>, vector<128x10xf32> -> vector<128x10xf32>
    %58 = vector.extract_strided_slice %57 {offsets = [0, 0], sizes = [128, 8], strides = [1, 1]} : vector<128x10xf32> to vector<128x8xf32>
    %59 = vector.extract_strided_slice %57 {offsets = [0, 8], sizes = [128, 1], strides = [1, 1]} : vector<128x10xf32> to vector<128x1xf32>
    %60 = vector.extract_strided_slice %57 {offsets = [0, 9], sizes = [128, 1], strides = [1, 1]} : vector<128x10xf32> to vector<128x1xf32>
    %61 = tpu.transpose %60, [1, 0] : vector<128x1xf32> -> vector<1x128xf32>
    %62 = vector.shape_cast %61 : vector<1x128xf32> to vector<1x128x1xf32>
    %63 = tpu.transpose %59, [1, 0] : vector<128x1xf32> -> vector<1x128xf32>
    %64 = vector.shape_cast %63 : vector<1x128xf32> to vector<1x1x128xf32>
    %65 = vector.broadcast %62 : vector<1x128x1xf32> to vector<1x128x128xf32>
    %66 = vector.broadcast %64 : vector<1x1x128xf32> to vector<1x128x128xf32>
    %67 = arith.addf %65, %66 : vector<1x128x128xf32>
    %cst_20 = arith.constant 2.000000e-01 : f32
    %68 = vector.broadcast %cst_20 : f32 to vector<1x128x128xf32>
    %69 = arith.mulf %68, %67 : vector<1x128x128xf32>
    %70 = arith.maximumf %67, %69 : vector<1x128x128xf32>
    %71 = vector.shape_cast %4 : vector<128x128xf32> to vector<1x128x128xf32>
    %72 = arith.addf %70, %71 : vector<1x128x128xf32>
    %cst_21 = arith.constant dense<0xFF800000> : vector<1x128xf32>
    %73 = vector.multi_reduction <maximumf>, %72, %cst_21 [2] : vector<1x128x128xf32> to vector<1x128xf32>
    %74 = vector.shape_cast %73 : vector<1x128xf32> to vector<1x128x1xf32>
    %75 = vector.broadcast %74 : vector<1x128x1xf32> to vector<1x128x128xf32>
    %76 = arith.subf %72, %75 : vector<1x128x128xf32>
    %77 = math.exp %76 : vector<1x128x128xf32>
    %cst_22 = arith.constant dense<0.000000e+00> : vector<1x128xf32>
    %78 = vector.multi_reduction <add>, %77, %cst_22 [2] : vector<1x128x128xf32> to vector<1x128xf32>
    %79 = vector.shape_cast %78 : vector<1x128xf32> to vector<1x128x1xf32>
    %80 = arith.truncf %77 : vector<1x128x128xf32> to vector<1x128x128xbf16>
    %81 = arith.truncf %58 : vector<128x8xf32> to vector<128x8xbf16>
    %82 = vector.shape_cast %80 : vector<1x128x128xbf16> to vector<128x128xbf16>
    %cst_23 = arith.constant dense<0.000000e+00> : vector<128x8xf32>
    %83 = tpu.matmul %82, %81, %cst_23 {dimension_numbers = #tpu.dot_dimension_numbers<[1], [0], [0], [1], [0, 0, 1, 1], [], []>} : vector<128x128xbf16>, vector<128x8xbf16>, vector<128x8xf32> -> vector<128x8xf32>
    %84 = vector.shape_cast %79 : vector<1x128x1xf32> to vector<128x1xf32>
    %85 = vector.broadcast %84 : vector<128x1xf32> to vector<128x8xf32>
    %86 = arith.divf %83, %85 : vector<128x8xf32>
    %87 = vector.broadcast %56 : vector<1x8xf32> to vector<128x8xf32>
    %88 = arith.addf %86, %87 : vector<128x8xf32>
    %c0_24 = arith.constant 0 : index
    %c0_25 = arith.constant 0 : index
    %c0_26 = arith.constant 0 : index
    %89 = vector.load %arg3[%c0_24, %c0_25, %c0_26] : memref<1x128x512xbf16, #tpu.memory_space<vmem>>, vector<1x128x512xbf16>
    %90 = vector.shape_cast %89 : vector<1x128x512xbf16> to vector<128x512xbf16>
    %91 = tpu.transpose %88, [1, 0] : vector<128x8xf32> -> vector<8x128xf32>
    %92 = arith.truncf %91 : vector<8x128xf32> to vector<8x128xbf16>
    %cst_27 = arith.constant dense<0.000000e+00> : vector<8x512xf32>
    %93 = tpu.matmul %92, %90, %cst_27 {dimension_numbers = #tpu.dot_dimension_numbers<[1], [0], [0], [1], [0, 0, 1, 1], [], []>} : vector<8x128xbf16>, vector<128x512xbf16>, vector<8x512xf32> -> vector<8x512xf32>
    %94 = vector.extract_strided_slice %93 {offsets = [0, 0], sizes = [8, 256], strides = [1, 1]} : vector<8x512xf32> to vector<8x256xf32>
    %95 = vector.extract_strided_slice %93 {offsets = [0, 256], sizes = [8, 256], strides = [1, 1]} : vector<8x512xf32> to vector<8x256xf32>
    %96 = arith.mulf %94, %95 : vector<8x256xf32>
    %cst_28 = arith.constant dense<0.000000e+00> : vector<256xf32>
    %97 = vector.multi_reduction <add>, %96, %cst_28 [0] : vector<8x256xf32> to vector<256xf32>
    %98 = vector.shape_cast %97 : vector<256xf32> to vector<1x256xf32>
    %c0_29 = arith.constant 0 : index
    %c0_30 = arith.constant 0 : index
    %c0_31 = arith.constant 0 : index
    %99 = vector.load %arg8[%c0_29, %c0_30, %c0_31] : memref<1x1x256xf32, #tpu.memory_space<vmem>>, vector<1x1x256xf32>
    %100 = vector.shape_cast %99 : vector<1x1x256xf32> to vector<1x256xf32>
    %101 = vector.shape_cast %98 : vector<1x256xf32> to vector<1x1x256xf32>
    tpu.vector_store %arg8[%c0_29, %c0_30, %c0_31], %101 {strides = array<i32>} : memref<1x1x256xf32, #tpu.memory_space<vmem>>, vector<1x1x256xf32>,
    return
  }
  func.func @transform_0(%arg0: i32) -> (i32, i32, i32) {
    %c0_i32 = arith.constant 0 : i32
    %c0_i32_0 = arith.constant 0 : i32
    %c0_i32_1 = arith.constant 0 : i32
    return %arg0, %c0_i32, %c0_i32_0 : i32, i32, i32
  }
  func.func @transform_1(%arg0: i32) -> (i32, i32, i32) {
    %c0_i32 = arith.constant 0 : i32
    %c0_i32_0 = arith.constant 0 : i32
    %c0_i32_1 = arith.constant 0 : i32
    return %arg0, %c0_i32, %c0_i32_0 : i32, i32, i32
  }
  func.func @transform_2(%arg0: i32) -> (i32, i32, i32) {
    %c0_i32 = arith.constant 0 : i32
    %c0_i32_0 = arith.constant 0 : i32
    %c0_i32_1 = arith.constant 0 : i32
    return %arg0, %c0_i32, %c0_i32_0 : i32, i32, i32
  }
  func.func @transform_3(%arg0: i32) -> (i32, i32) {
    %c0_i32 = arith.constant 0 : i32
    %c0_i32_0 = arith.constant 0 : i32
    %c0_i32_1 = arith.constant 0 : i32
    return %c0_i32, %c0_i32_0 : i32, i32
  }
  func.func @transform_4(%arg0: i32) -> (i32, i32) {
    %c0_i32 = arith.constant 0 : i32
    %c0_i32_0 = arith.constant 0 : i32
    %c0_i32_1 = arith.constant 0 : i32
    return %c0_i32, %c0_i32_0 : i32, i32
  }
  func.func @transform_5(%arg0: i32) -> (i32, i32) {
    %c0_i32 = arith.constant 0 : i32
    %c0_i32_0 = arith.constant 0 : i32
    %c0_i32_1 = arith.constant 0 : i32
    return %c0_i32, %c0_i32_0 : i32, i32
  }
  func.func @transform_6(%arg0: i32) -> (i32, i32) {
    %c0_i32 = arith.constant 0 : i32
    %c0_i32_0 = arith.constant 0 : i32
    %c0_i32_1 = arith.constant 0 : i32
    return %c0_i32, %c0_i32_0 : i32, i32
  }
  func.func @transform_7(%arg0: i32) -> (i32, i32, i32) {
    %c0_i32 = arith.constant 0 : i32
    %c0_i32_0 = arith.constant 0 : i32
    %c0_i32_1 = arith.constant 0 : i32
    return %arg0, %c0_i32, %c0_i32_0 : i32, i32, i32
  }
}

</mosaic_0001>

<bundles_post_ra>
// kernel: tpu_custom_call.1
= control target key start
LH: loop header
LB: loop body
LE: loop exit
PB: predicated region body
PF: predicated region fallthrough
CT: control target
= control target key end

     0   :  { %12 = vsyncpa [#allocation3], 0  ;;  %s4443_s0 = inlined_call_operand.vmem [shape: bf16[2,128,8], index: 0, kind: input, shape index: {}]   ;;  %s4444_s1 = inlined_call_operand.vmem [shape: bf16[2,128,128], index: 1, kind: input, shape index: {}]   ;;  %s4445_s2 = inlined_call_operand.hbm [shape: bf16[2,128,512], index: 2, kind: input, shape index: {}]   ;;  %s4446_s3 = inlined_call_operand.vmem [shape: bf16[8,36], index: 3, kind: input, shape index: {}]   ;;  %s4447_s4 = inlined_call_operand.vmem [shape: f32[1,32], index: 4, kind: input, shape index: {}]   ;;  %s4448_s5 = inlined_call_operand.vmem [shape: bf16[32,10], index: 5, kind: input, shape index: {}]   ;;  %s4449_s6 = inlined_call_operand.vmem [shape: f32[1,8], index: 6, kind: input, shape index: {}]   ;;  %s4450_s7 = inlined_call_operand.hbm [shape: f32[2,1,256], index: 7, kind: output, shape index: {}]  }
   0x1   :  { %14 = vsyncpa [#allocation3 + $0x1], 0 }
   0x2   :  { %15 = vsyncpa [#allocation4], 0 }
   0x3   :  { %17 = vsyncpa [#allocation4 + $0x1], 0  ;;  %s3651_s24 = smov 0   ;;  %s3653_s25 = smov 0  }
   0x4   :  { %s3655_s26 = smov 0   ;;  %s3657_s27 = smov 0  }
   0x5 LB: > { %s3672_s28 = sadd.s32 4294967295, %s3597_s27   ;;  %s2872_s29 = sadd.s32 4294967294, %s3597_s27   ;;  %s3597_s27 = sphi %s3657_s27, %s4465_s27   ;;  %s3593_s26 = sphi %s3655_s26, %s4464_s26   ;;  %s3589_s25 = sphi %s3653_s25, %s4463_s25   ;;  %s3585_s24 = sphi %s3651_s24, %s4462_s24  }
   0x6   : > { %s3676_s30 = sadd.s32 1, %s3597_s27   ;;  %s82_s8 = sadd.s32 1, %s3593_s26 }
   0x7   : > { %s79_s9 = ssub.s32 %s3597_s27, %s3676_s30  ;;  %p89_p0 = scmp.ne.s32.totalorder %s3593_s26, %s3589_s25 }
   0x8   : > { %p80_p1 = scmp.eq.s32.totalorder %s79_s9, 0  ;;  %p90_p2 = scmp.eq.s32.totalorder %s3597_s27, 0 }
   0x9   : > { %p95_p3 = scmp.ne.s32.totalorder %s3589_s25, %s3585_s24  ;;  %p96_p4 = scmp.eq.s32.totalorder %s3672_s28, 0 }
   0xa   : > { %s3688_s10 = scalar_select %p80_p1, %s3593_s26, %s82_s8  }
   0xb   : > { %p3690_p5 = por %p90_p2, %p89_p0  ;;  %p3694_p6 = por %p96_p4, %p95_p3 }
   0xc   : > { %p203_p7 = scmp.eq.s32.totalorder %s3672_s28, 1  ;;  %p209_p8 = scmp.eq.s32.totalorder %s2872_s29, 1 }
   0xd   : > { %p3207_p10 = scmp.lt.s32.totalorder %s3597_s27, 2  ;;  %s257_s15 = sand.u32 1, %s3593_s26  }
   0xe   : > { %p3701_p11 = por %p203_p7, %p89_p0  ;;  %p3705_p12 = por %p209_p8, %p95_p3 }
   0xf   : > { %s2950_s16 = sshll.u32 %s3597_s27, 12  ;;  %s2875_s17 = sshll.u32 %s257_s15, 8 }
  0x10   : > { %s4455_s13 = scalar_select %p3701_p11, 1, 0 }
  0x11   : > { %s4456_s14 = scalar_select %p3705_p12, 1, 0 }
  0x12   : > { %s3714_s20 = scalar_lea.hbm %s4445_s2, %s2950_s16  ;;  %s261_s21 = scalar_lea.vmem [#allocation2], %s2875_s17 }
  0x13   : > { %s268_s22 = sshll.u32 %s261_s21, 4  ;;  %p3718_p13 = pnand %p3207_p10, %p3690_p5  ;;  %s3722_s22 = int_to_ptr.vmem [resolvable:$true] %s268_s22 }
  0x14   : > { %s3724_s29 = scalar_lea.sflag [#allocation3], %s257_s15  ;;  %s3501_s8 = scalar_lea.hbm %s3714_s20, 4096 }
  0x15   : > { %p3502_p0 = scmp.ne.s32.totalorder %s3714_s20, %s3501_s8  ;;  %p3503_p1 = pneg %p3718_p13 }
  0x16   : > { %s3506_s16 = scalar_lea.hbm %s4445_s2, 8192  ;;  %p3507_p4 = scmp.lt.u32.totalorder %s3714_s20, %s4445_s2 }
  0x17   : > { %p3504_p2 = pnand %p3503_p1, %p3502_p0  ;;  %p3508_p5 = scmp.lt.u32.totalorder %s3506_s16, %s3501_s8 }
  0x18   : > { %p3510_p8 = scmp.lt.u32.totalorder %s3501_s8, %s3714_s20 }
  0x19   : > { %p3505_p3 = pneg %p3504_p2  ;;  %p3509_p7 = por %p3508_p5, %p3507_p4 }
  0x1b   : > { %p3511_p10 = por %p3510_p8, %p3509_p7 }
  0x1d   : > { %p3512_p9 = pnand %p3511_p10, %p3505_p3 }
  0x1f   : > { %3515 = shalt.err (!%p3512_p9)
}
  0x20   : > { %s3516_s15 = scalar_lea.vmem %s3722_s22, 4096  ;;  %s3599_s19 = smov [#allocation2]  }
  0x21   : > { %p3517_p0 = scmp.ne.s32.totalorder %s3722_s22, %s3516_s15  ;;  %s3521_s21 = sshll.u32 %s3599_s19, 4  ;;  %s3522_s21 = int_to_ptr.vmem [resolvable:$false] %s3521_s21 }
  0x22   : > { %s3523_s9 = scalar_lea.vmem %s3522_s21, 8192  ;;  %p3524_p11 = scmp.lt.s32.totalorder %s3722_s22, %s3522_s21 }
  0x23   : > { %p3519_p2 = pnand %p3517_p0, %p3503_p1  ;;  %p3525_p4 = scmp.lt.s32.totalorder %s3523_s9, %s3516_s15 }
  0x25   : > { %p3520_p12 = pneg %p3519_p2  ;;  %p3526_p5 = por %p3525_p4, %p3524_p11 }
  0x27   : > { %p3527_p7 = pnand %p3526_p5, %p3520_p12 }
  0x29   : > { %3530 = shalt.err (!%p3527_p7)
}
  0x2a   : > { %s3600_s8 = smov 256   ;;  %s3601_s11 = smov 16  }
  0x2b   : > { %3202 = dma.hbm_to_vmem [thread:$0]  (!%p3718_p13), %s3714_s20, 4096, %s3722_s22, %s3724_s29, %s3600_s8, %s3600_s8, %s3601_s11  }
  0x2c   : > { %p2878_p9 = scmp.ge.s32.totalorder %s3597_s27, 1  ;;  %p276_p1 = scmp.lt.s32.totalorder %s3597_s27, 3 }
  0x2e   : > { %p277_p3 = pnand %p2878_p9, %p276_p1 }
  0x2f   : > { %s3755_s16 = sand.u32 (!%p277_p3), 1, %s3589_s25  }
  0x30   : > { %280 = sbr.rel (%p277_p3) target bundleno = 2652 (0xa5c), region = 48  ;;  %s2879_s17 = sshll.u32 (!%p277_p3), %s3755_s16, 8 }
  0x31   : > { %s283_s18 = scalar_lea.sflag (!%p277_p3), [#allocation3], %s3755_s16  ;;  %s3759_s15 = scalar_lea.vmem (!%p277_p3), [#allocation2], %s2879_s17 }
  0x37   : > { %3576 = dma.done.wait (%p3694_p6), %s283_s18, 4096  }
  0x38   : > { %3578 = vsyncadd (%p3694_p6), %s283_s18, 4294963200  ;;  %p327_p11 = scmp.lt.s32.totalorder %s3672_s28, 1  ;;  %vm453_vm0 = vcmask 1043456   ;;  %vm428_vm1 = vcmask 64512   ;;  %v386_v0 = vld [vmem:[%s4446_s3] sm:$0xf] }
  0x39   : > { %3194 = vmatprep.subr.msk.bf16.mxu0 %vm453_vm0, %v386_v0  ;;  %v455_v1 = vsel %vm453_vm0, %v386_v0, 0  ;;  %s3602_s12 = smov 96   ;;  %s3603_s8 = smov 94   ;;  %vm1627_vm2 = vcmask 130048   ;;  %vm1707_vm3 = vcmask 261120  }
  0x3a   : > { %s3767_s20 = scalar_select %p327_p11, %s3672_s28, 1  ;;  %3061 = vmatpush3.bf16.msra.mxu0 %v455_v1 }
  0x3b   : > { %s3604_s11 = smov 112   ;;  %s3606_s21 = smov 16  }
  0x3c   : > { %s2951_s22 = sshll.u32 %s3767_s20, 6  ;;  %p4459_p12 = scmp.ne.s32.totalorder %s4455_s13, 0 }
  0x3d   : > { %s331_s19 = scalar_lea.vmem %s4443_s0, %s2951_s22  ;;  %s3849_s23 = scalar_lea.vmem %s4444_s1, %s2951_s22 }
  0x3e   : > { %v3251_v2 = vld [vmem:[%s331_s19] sm:$0xff]   ;;  %v3252_v3 = vld [vmem:[%s331_s19 + $0x8] sm:$0xff]   ;;  %v3253_v4 = vld [vmem:[%s331_s19 + $0x10] sm:$0xff]  }
  0x3f   : > { %3062 = vmatprep.mubr.msk.bf16.mxu0 %vm428_vm1, %v3251_v2  ;;  %v3254_v5 = vld [vmem:[%s331_s19 + $0x18] sm:$0xff]   ;;  %v3255_v6 = vld [vmem:[%s331_s19 + $0x20] sm:$0xff]   ;;  %v3256_v7 = vld [vmem:[%s331_s19 + $0x28] sm:$0xff]  }
  0x40   : > { %3063 = vmatmul.mubr.msk.bf16.vlgmr.msra.gmra.mrb[0].mxu0 %vm428_vm1, %v3252_v3  ;;  %v3257_v8 = vld [vmem:[%s331_s19 + $0x30] sm:$0xff]   ;;  %v3258_v9 = vld [vmem:[%s331_s19 + $0x38] sm:$0xff]  }
  0x41   : > { %3066 = vmatprep.mubr.msk.bf16.mxu0 %vm428_vm1, %v3253_v4 }
  0x48   : > { %3067 = vmatmul.mubr.msk.bf16.gmra.mrb[4].mxu0 %vm428_vm1, %v3254_v5 }
  0x49   : > { %3070 = vmatprep.mubr.msk.bf16.mxu0 %vm428_vm1, %v3255_v6 }
  0x50   : > { %3071 = vmatmul.mubr.msk.bf16.gmra.mrb[8].mxu0 %vm428_vm1, %v3256_v7 }
  0x51   : > { %3074 = vmatprep.mubr.msk.bf16.mxu0 %vm428_vm1, %v3257_v8 }
  0x58   : > { %3075 = vmatmul.mubr.msk.bf16.gmra.mrb[12].mxu0 %vm428_vm1, %v3258_v9  ;;  %v4452_v9 = vlaneseq }
 0x113   : > { %v3064_v10 = vpop.f32.mrb[0].mxu0 }
 0x114   : > { %788 = vrot.lane.b32.xlu0 %v3064_v10, %s3602_s12  ;;  %574 = vrot.lane.b32.xlu1 %v3064_v10, %s3603_s8  ;;  %v491_v11 = vpop.f32.mrb[1].mxu0 }
 0x115   : > { %v3065_v12 = vpop.f32.mrb[2].mxu0 }
 0x116   : > { %v1266_v13 = vpack.c.bf16 %v3065_v12, %v3064_v10  ;;  %v494_v14 = vpop.f32.mrb[3].mxu0  ;;  %v651_v10 = vshrl.u32 %v4452_v9, 7 }
 0x117   : > { %v1265_v15 = vpack.c.bf16 %v494_v14, %v491_v11 }
 0x118   : > { %570 = vrot.lane.b32.xlu0 %v491_v11, %s3603_s8  ;;  %576 = vrot.lane.b32.xlu1 %v3065_v12, %s3603_s8 }
 0x119   : > { %3078 = vmatprep.subr.bf16.mxu1 %v1265_v15 }
 0x11a   : > { %3079 = vmatpush3.bf16.msra.mxu1 %v1265_v15 }
 0x11b   : > { %3080 = vmatprep.subr.bf16.mxu1 %v1266_v13  ;;  %v3068_v16 = vpop.f32.mrb[4].mxu0 }
 0x11c   : > { %784 = vrot.lane.b32.xlu0 %v491_v11, %s3602_s12  ;;  %790 = vrot.lane.b32.xlu1 %v3065_v12, %s3602_s12  ;;  %v507_v17 = vpop.f32.mrb[5].mxu0  ;;  %v719_v11 = vsub.s32 1, %v651_v10 }
 0x11d   : > { %v3069_v18 = vpop.f32.mrb[6].mxu0 }
 0x11e   : > { %3081 = vmatpush3.bf16.msra.mxu1 %v1266_v13  ;;  %v1268_v19 = vpack.c.bf16 %v3069_v18, %v3068_v16  ;;  %v510_v20 = vpop.f32.mrb[7].mxu0 }
 0x11f   : > { %v1267_v21 = vpack.c.bf16 %v510_v20, %v507_v17 }
 0x120   : > { %786 = vrot.lane.b32.xlu1 %v494_v14, %s3602_s12  ;;  %572 = vrot.lane.b32.xlu0 %v494_v14, %s3603_s8  ;;  %v3830_v14 = vsub.s32 0, %v651_v10 }
 0x121   : > { %3082 = vmatprep.subr.bf16.mxu1 %v1267_v21 }
 0x122   : > { %3083 = vmatpush3.bf16.msra.mxu1 %v1267_v21 }
 0x123   : > { %3084 = vmatprep.subr.bf16.mxu1 %v1268_v19  ;;  %v3072_v22 = vpop.f32.mrb[8].mxu0 }
 0x124   : > { %1412 = vrot.lane.b32.xlu0 %v1266_v13, %s3604_s11  ;;  %584 = vrot.lane.b32.xlu1 %v3069_v18, %s3603_s8  ;;  %v523_v23 = vpop.f32.mrb[9].mxu0 }
 0x125   : > { %v3073_v24 = vpop.f32.mrb[10].mxu0 }
 0x126   : > { %3085 = vmatpush3.bf16.msra.mxu1 %v1268_v19  ;;  %v1270_v25 = vpack.c.bf16 %v3073_v24, %v3072_v22  ;;  %v526_v26 = vpop.f32.mrb[11].mxu0 }
 0x127   : > { %v1269_v27 = vpack.c.bf16 %v526_v26, %v523_v23 }
 0x128   : > { %1410 = vrot.lane.b32.xlu0 %v1265_v15, %s3604_s11  ;;  %798 = vrot.lane.b32.xlu1 %v3069_v18, %s3602_s12 }
 0x129   : > { %3086 = vmatprep.subr.bf16.mxu1 %v1269_v27 }
 0x12a   : > { %3087 = vmatpush3.bf16.msra.mxu1 %v1269_v27 }
 0x12b   : > { %3088 = vmatprep.subr.bf16.mxu1 %v1270_v25  ;;  %v3076_v28 = vpop.f32.mrb[12].mxu0 }
 0x12c   : > { %582 = vrot.lane.b32.xlu0 %v3068_v16, %s3603_s8  ;;  %580 = vrot.lane.b32.xlu1 %v510_v20, %s3603_s8  ;;  %v539_v29 = vpop.f32.mrb[13].mxu0 }
 0x12d   : > { %v3077_v30 = vpop.f32.mrb[14].mxu0 }
 0x12e   : > { %3089 = vmatpush3.bf16.msra.mxu1 %v1270_v25  ;;  %v3800_v31 = vpack.c.bf16 %v3077_v30, %v3076_v28  ;;  %v542_v32 = vpop.f32.mrb[15].mxu0 }
 0x12f   : > { %v1271_v33 = vpack.c.bf16 %v542_v32, %v539_v29 }
 0x130   : > { %796 = vrot.lane.b32.xlu0 %v3068_v16, %s3602_s12  ;;  %794 = vrot.lane.b32.xlu1 %v510_v20, %s3602_s12  ;;  %v3605_v16 = vmov 1966171168  }
 0x131   : > { %3090 = vmatprep.subr.bf16.mxu1 %v1271_v33 }
 0x132   : > { %3091 = vmatpush3.bf16.msra.mxu1 %v1271_v33 }
 0x133   : > { %3092 = vmatprep.subr.bf16.mxu1 %v3800_v31 }
 0x134   : > { %578 = vrot.lane.b32.xlu0 %v507_v17, %s3603_s8  ;;  %592 = vrot.lane.b32.xlu1 %v3073_v24, %s3603_s8 }
 0x136   : > { %3093 = vmatpush3.bf16.msra.mxu1 %v3800_v31 }
 0x138   : > { %792 = vrot.lane.b32.xlu0 %v507_v17, %s3602_s12  ;;  %806 = vrot.lane.b32.xlu1 %v3073_v24, %s3602_s12  ;;  %v866_v17 = vunpack.c.l.s4 %v3605_v16 }
 0x13a   : > { %v867_v18 = vunpack.c.0.s8 %v866_v17 }
 0x13c   : > { %1416 = vrot.lane.b32.xlu0 %v1268_v19, %s3604_s11  ;;  %588 = vrot.lane.b32.xlu1 %v526_v26, %s3603_s8  ;;  %v3833_v19 = vsub.s32 %v867_v18, %v651_v10 }
 0x140   : > { %1414 = vrot.lane.b32.xlu0 %v1267_v21, %s3604_s11  ;;  %802 = vrot.lane.b32.xlu1 %v526_v26, %s3602_s12 }
 0x144   : > { %590 = vrot.lane.b32.xlu0 %v3072_v22, %s3603_s8  ;;  %600 = vrot.lane.b32.xlu1 %v3077_v30, %s3603_s8 }
 0x148   : > { %804 = vrot.lane.b32.xlu0 %v3072_v22, %s3602_s12  ;;  %814 = vrot.lane.b32.xlu1 %v3077_v30, %s3602_s12 }
 0x14c   : > { %586 = vrot.lane.b32.xlu0 %v523_v23, %s3603_s8  ;;  %596 = vrot.lane.b32.xlu1 %v542_v32, %s3603_s8 }
 0x150   : > { %800 = vrot.lane.b32.xlu0 %v523_v23, %s3602_s12  ;;  %810 = vrot.lane.b32.xlu1 %v542_v32, %s3602_s12 }
 0x154   : > { %1420 = vrot.lane.b32.xlu0 %v1270_v25, %s3604_s11  ;;  %1422 = vrot.lane.b32.xlu1 %v1271_v33, %s3604_s11 }
 0x158   : > { %1418 = vrot.lane.b32.xlu0 %v1269_v27, %s3604_s11  ;;  %v2955_v27 = vld [vmem:[%s3849_s23] sm:$0xff]  }
 0x159   : > { %v3853_v30 = vunpack.c.l.bf16 %v2955_v27 }
 0x15c   : > { %598 = vrot.lane.b32.xlu0 %v3076_v28, %s3603_s8 }
 0x160   : > { %812 = vrot.lane.b32.xlu0 %v3076_v28, %s3602_s12 }
 0x164   : > { %594 = vrot.lane.b32.xlu0 %v539_v29, %s3603_s8  ;;  %s3607_s8 = smov 119  }
 0x168   : > { %808 = vrot.lane.b32.xlu0 %v539_v29, %s3602_s12  ;;  %s3610_s12 = smov [#allocation5]  }
 0x186   : > { %v789_v34 = vpop.permute.xlu0 %788  ;;  %v575_v35 = vpop.permute.xlu1 %574 }
 0x18a   : > { %v571_v36 = vpop.permute.xlu0 %570  ;;  %v577_v37 = vpop.permute.xlu1 %576 }
 0x18b   : > { %618 = vxpose.xlu0.b32.start [1/16] (narrow) %v571_v36, 8 }
 0x18e   : > { %v785_v38 = vpop.permute.xlu0 %784  ;;  %v791_v39 = vpop.permute.xlu1 %790 }
 0x18f   : > { %832 = vxpose.xlu1.b32.start [1/16] (narrow) %v785_v38, 8  ;;  %v3859_v38 = vunpack.c.h.bf16 %v2955_v27 }
 0x192   : > { %v787_v40 = vpop.permute.xlu1 %786  ;;  %v573_v41 = vpop.permute.xlu0 %572 }
 0x193   : > { %619 = vxpose.xlu0.b32.cont [2/16] (narrow) %v573_v41, 8  ;;  %833 = vxpose.xlu1.b32.cont [2/16] (narrow) %v787_v40, 8  ;;  %v2986_v41 = vld [vmem:[%s3849_s23 + $0x8] sm:$0xff]  }
 0x196   : > { %v1413_v42 = vpop.permute.xlu0 %1412  ;;  %v585_v43 = vpop.permute.xlu1 %584 }
 0x197   : > { %620 = vxpose.xlu0.b32.cont [3/16] (narrow) %v575_v35, 8  ;;  %834 = vxpose.xlu1.b32.cont [3/16] (narrow) %v789_v34, 8 }
 0x19a   : > { %v1411_v44 = vpop.permute.xlu0 %1410  ;;  %v799_v45 = vpop.permute.xlu1 %798 }
 0x19b   : > { %3110 = vmatprep.subr.bf16.mxu0 %v1411_v44  ;;  %621 = vxpose.xlu0.b32.cont [4/16] (narrow) %v577_v37, 8 }
 0x19c   : > { %835 = vxpose.xlu1.b32.cont [4/16] (narrow) %v791_v39, 8  ;;  %3111 = vmatpush3.bf16.msra.mxu0 %v1411_v44 }
 0x19d   : > { %3112 = vmatprep.subr.bf16.mxu0 %v1413_v42 }
 0x19e   : > { %v583_v46 = vpop.permute.xlu0 %582  ;;  %v581_v47 = vpop.permute.xlu1 %580 }
 0x1a0   : > { %3113 = vmatpush3.bf16.msra.mxu0 %v1413_v42 }
 0x1a2   : > { %v797_v48 = vpop.permute.xlu0 %796  ;;  %v795_v49 = vpop.permute.xlu1 %794 }
 0x1a6   : > { %v579_v50 = vpop.permute.xlu0 %578  ;;  %v593_v51 = vpop.permute.xlu1 %592 }
 0x1a7   : > { %622 = vxpose.xlu0.b32.cont [5/16] (narrow) %v579_v50, 8 }
 0x1aa   : > { %v793_v52 = vpop.permute.xlu0 %792  ;;  %v807_v53 = vpop.permute.xlu1 %806 }
 0x1ab   : > { %623 = vxpose.xlu0.b32.cont [6/16] (narrow) %v581_v47, 8  ;;  %836 = vxpose.xlu1.b32.cont [5/16] (narrow) %v793_v52, 8 }
 0x1ae   : > { %v1417_v54 = vpop.permute.xlu0 %1416  ;;  %v589_v55 = vpop.permute.xlu1 %588 }
 0x1af   : > { %624 = vxpose.xlu0.b32.cont [7/16] (narrow) %v583_v46, 8  ;;  %837 = vxpose.xlu1.b32.cont [6/16] (narrow) %v795_v49, 8  ;;  %v3867_v46 = vunpack.c.l.bf16 %v2986_v41 }
 0x1b2   : > { %v1415_v56 = vpop.permute.xlu0 %1414  ;;  %v803_v57 = vpop.permute.xlu1 %802 }
 0x1b3   : > { %3114 = vmatprep.subr.bf16.mxu0 %v1415_v56  ;;  %625 = vxpose.xlu0.b32.cont [8/16] (narrow) %v585_v43, 8 }
 0x1b4   : > { %838 = vxpose.xlu1.b32.cont [7/16] (narrow) %v797_v48, 8  ;;  %3115 = vmatpush3.bf16.msra.mxu0 %v1415_v56 }
 0x1b5   : > { %3116 = vmatprep.subr.bf16.mxu0 %v1417_v54 }
 0x1b6   : > { %v591_v58 = vpop.permute.xlu0 %590  ;;  %v601_v59 = vpop.permute.xlu1 %600 }
 0x1b8   : > { %839 = vxpose.xlu1.b32.cont [8/16] (narrow) %v799_v45, 8  ;;  %3117 = vmatpush3.bf16.msra.mxu0 %v1417_v54 }
 0x1ba   : > { %v805_v60 = vpop.permute.xlu0 %804  ;;  %v815_v61 = vpop.permute.xlu1 %814 }
 0x1be   : > { %v587_v62 = vpop.permute.xlu0 %586  ;;  %v597_v0 = vpop.permute.xlu1 %596 }
 0x1bf   : > { %626 = vxpose.xlu0.b32.cont [9/16] (narrow) %v587_v62, 8 }
 0x1c2   : > { %v801_v63 = vpop.permute.xlu0 %800  ;;  %v811_v2 = vpop.permute.xlu1 %810 }
 0x1c3   : > { %627 = vxpose.xlu0.b32.cont [10/16] (narrow) %v589_v55, 8  ;;  %840 = vxpose.xlu1.b32.cont [9/16] (narrow) %v801_v63, 8  ;;  %v2987_v55 = vld [vmem:[%s3849_s23 + $0x10] sm:$0xff]  }
 0x1c6   : > { %v1421_v1 = vpop.permute.xlu0 %1420  ;;  %v1423_v5 = vpop.permute.xlu1 %1422 }
 0x1c7   : > { %628 = vxpose.xlu0.b32.cont [11/16] (narrow) %v591_v58, 8  ;;  %841 = vxpose.xlu1.b32.cont [10/16] (narrow) %v803_v57, 8 }
 0x1ca   : > { %v1419_v3 = vpop.permute.xlu0 %1418 }
 0x1cb   : > { %3118 = vmatprep.subr.bf16.mxu0 %v1419_v3  ;;  %629 = vxpose.xlu0.b32.cont [12/16] (narrow) %v593_v51, 8 }
 0x1cc   : > { %842 = vxpose.xlu1.b32.cont [11/16] (narrow) %v805_v60, 8  ;;  %3119 = vmatpush3.bf16.msra.mxu0 %v1419_v3 }
 0x1cd   : > { %3120 = vmatprep.subr.bf16.mxu0 %v1421_v1 }
 0x1ce   : > { %v599_v4 = vpop.permute.xlu0 %598 }
 0x1d0   : > { %843 = vxpose.xlu1.b32.cont [12/16] (narrow) %v807_v53, 8  ;;  %3121 = vmatpush3.bf16.msra.mxu0 %v1421_v1  ;;  %v3874_v53 = vunpack.c.h.bf16 %v2986_v41  ;;  %v2990_v41 = vld [vmem:[%s3849_s23 + $0x28] sm:$0xff]  }
 0x1d1   : > { %3122 = vmatprep.subr.bf16.mxu0 %v1423_v5 }
 0x1d2   : > { %v813_v6 = vpop.permute.xlu0 %812 }
 0x1d4   : > { %3123 = vmatpush3.bf16.msra.mxu0 %v1423_v5 }
 0x1d6   : > { %v595_v7 = vpop.permute.xlu0 %594 }
 0x1d7   : > { %630 = vxpose.xlu0.b32.cont [13/16] (narrow) %v595_v7, 8 }
 0x1da   : > { %v809_v8 = vpop.permute.xlu0 %808 }
 0x1db   : > { %631 = vxpose.xlu0.b32.cont [14/16] (narrow) %v597_v0, 8  ;;  %844 = vxpose.xlu1.b32.cont [13/16] (narrow) %v809_v8, 8 }
 0x1df   : > { %632 = vxpose.xlu0.b32.cont [15/16] (narrow) %v599_v4, 8  ;;  %845 = vxpose.xlu1.b32.cont [14/16] (narrow) %v811_v2, 8  ;;  %v3890_v4 = vunpack.c.h.bf16 %v2987_v55 }
 0x1e3   : > { %633 = vxpose.xlu0.b32.end [16/16] (narrow) %v601_v59, 8  ;;  %846 = vxpose.xlu1.b32.cont [15/16] (narrow) %v813_v6, 8  ;;  %v2988_v6 = vld [vmem:[%s3849_s23 + $0x18] sm:$0xff]  }
 0x1e4   : > { %v3899_v16 = vunpack.c.l.bf16 %v2988_v6 }
 0x1e7   : > { %847 = vxpose.xlu1.b32.end [16/16] (narrow) %v815_v61, 8  ;;  %v3882_v61 = vunpack.c.l.bf16 %v2987_v55 }
 0x227   : > { %v634_v12 = vpop.trf.xlu0 }
 0x228   : > { %v720_v13 = vrot.slane %v634_v12, %v719_v11  ;;  %v653_v15 = vrot.slane %v634_v12, %v3830_v14 }
 0x22a   : > { %754 = vbcast.lane.b32.xlu0 %v720_v13, 320  ;;  %722 = vbcast.lane.b32.xlu1 %v720_v13, 256 }
 0x22b   : > { %v848_v20 = vpop.trf.xlu1 }
 0x22c   : > { %v3836_v21 = vrot.slane %v848_v20, %v3833_v19 }
 0x22e   : > { %758 = vbcast.lane.b32.xlu0 %v720_v13, 328  ;;  %726 = vbcast.lane.b32.xlu1 %v720_v13, 264  ;;  %v872_v22 = vcombine.high %v3836_v21, %v3836_v21 }
 0x230   : > { %v886_v23 = vrot.slane %v872_v22, %v3833_v19  ;;  %v2989_v22 = vld [vmem:[%s3849_s23 + $0x20] sm:$0xff]  }
 0x231   : > { %v3905_v27 = vunpack.c.h.bf16 %v2989_v22 }
 0x232   : > { %766 = vbcast.lane.b32.xlu0 %v720_v13, 344  ;;  %730 = vbcast.lane.b32.xlu1 %v720_v13, 272  ;;  %v3842_v24 = vrot.slane %v886_v23, %v3830_v14 }
 0x236   : > { %770 = vbcast.lane.b32.xlu0 %v720_v13, 352  ;;  %734 = vbcast.lane.b32.xlu1 %v720_v13, 280 }
 0x23a   : > { %774 = vbcast.lane.b32.xlu0 %v720_v13, 360  ;;  %738 = vbcast.lane.b32.xlu1 %v720_v13, 288 }
 0x23e   : > { %778 = vbcast.lane.b32.xlu0 %v720_v13, 368  ;;  %742 = vbcast.lane.b32.xlu1 %v720_v13, 296 }
 0x242   : > { %782 = vbcast.lane.b32.xlu0 %v720_v13, 376  ;;  %746 = vbcast.lane.b32.xlu1 %v720_v13, 304 }
 0x246   : > { %655 = vbcast.lane.b32.xlu0 %v653_v15, 256  ;;  %750 = vbcast.lane.b32.xlu1 %v720_v13, 312 }
 0x24a   : > { %659 = vbcast.lane.b32.xlu0 %v653_v15, 264  ;;  %762 = vbcast.lane.b32.xlu1 %v720_v13, 336 }
 0x24e   : > { %663 = vbcast.lane.b32.xlu0 %v653_v15, 272  ;;  %667 = vbcast.lane.b32.xlu1 %v653_v15, 280 }
 0x252   : > { %671 = vbcast.lane.b32.xlu0 %v653_v15, 288  ;;  %675 = vbcast.lane.b32.xlu1 %v653_v15, 296 }
 0x256   : > { %683 = vbcast.lane.b32.xlu0 %v653_v15, 312  ;;  %679 = vbcast.lane.b32.xlu1 %v653_v15, 304 }
 0x25a   : > { %699 = vbcast.lane.b32.xlu0 %v653_v15, 344  ;;  %687 = vbcast.lane.b32.xlu1 %v653_v15, 320 }
 0x25e   : > { %715 = vbcast.lane.b32.xlu0 %v653_v15, 376  ;;  %691 = vbcast.lane.b32.xlu1 %v653_v15, 328 }
 0x262   : > { %695 = vbcast.lane.b32.xlu1 %v653_v15, 336 }
 0x266   : > { %703 = vbcast.lane.b32.xlu1 %v653_v15, 352 }
 0x26a   : > { %707 = vbcast.lane.b32.xlu1 %v653_v15, 360 }
 0x26e   : > { %711 = vbcast.lane.b32.xlu1 %v653_v15, 368 }
 0x29c   : > { %v755_v25 = vpop.permute.xlu0 %754  ;;  %v723_v26 = vpop.permute.xlu1 %722 }
 0x29d   : > { %v913_v28 = vadd.f32 %v3842_v24, %v723_v26  ;;  %v921_v11 = vadd.f32 %v3842_v24, %v755_v25 }
 0x29f   : > { %v945_v29 = vmul.f32 0.2, %v913_v28  ;;  %v953_v23 = vmul.f32 0.2, %v921_v11 }
 0x2a0   : > { %v759_v32 = vpop.permute.xlu0 %758  ;;  %v727_v33 = vpop.permute.xlu1 %726 }
 0x2a1   : > { %v914_v34 = vadd.f32 %v3842_v24, %v727_v33  ;;  %v977_v35 = vmax.f32 %v913_v28, %v945_v29  ;;  %v922_v1 = vadd.f32 %v3842_v24, %v759_v32 }
 0x2a3   : > { %v946_v36 = vmul.f32 0.2, %v914_v34  ;;  %v3857_v37 = vadd.f32 %v3853_v30, %v977_v35  ;;  %v954_v12 = vmul.f32 0.2, %v922_v1 }
 0x2a4   : > { %v767_v39 = vpop.permute.xlu0 %766  ;;  %v731_v40 = vpop.permute.xlu1 %730 }
 0x2a5   : > { %v915_v42 = vadd.f32 %v3842_v24, %v731_v40  ;;  %1057 = vmax.xlane.f32.xlu0 %v3857_v37  ;;  %v978_v43 = vmax.f32 %v914_v34, %v946_v36  ;;  %v924_v26 = vadd.f32 %v3842_v24, %v767_v39  ;;  %v986_v25 = vmax.f32 %v922_v1, %v954_v12 }
 0x2a6   : > { %v3911_v34 = vunpack.c.h.bf16 %v2988_v6  ;;  %v3915_v39 = vunpack.c.l.bf16 %v2989_v22 }
 0x2a7   : > { %v947_v44 = vmul.f32 0.2, %v915_v42  ;;  %v3865_v45 = vadd.f32 %v3859_v38, %v978_v43  ;;  %v3919_v43 = vadd.f32 %v3905_v27, %v986_v25 }
 0x2a8   : > { %v735_v47 = vpop.permute.xlu1 %734  ;;  %v771_v48 = vpop.permute.xlu0 %770 }
 0x2a9   : > { %v916_v49 = vadd.f32 %v3842_v24, %v735_v47  ;;  %1059 = vmax.xlane.f32.xlu1 %v3865_v45  ;;  %v979_v50 = vmax.f32 %v915_v42, %v947_v44  ;;  %v925_v28 = vadd.f32 %v3842_v24, %v771_v48  ;;  %v956_v42 = vmul.f32 0.2, %v924_v26 }
 0x2aa   : > { %v985_v44 = vmax.f32 %v921_v11, %v953_v23  ;;  %v3921_v47 = vunpack.c.l.bf16 %v2990_v41 }
 0x2ab   : > { %v948_v51 = vmul.f32 0.2, %v916_v49  ;;  %v3872_v52 = vadd.f32 %v3867_v46, %v979_v50  ;;  %v957_v48 = vmul.f32 0.2, %v925_v28 }
 0x2ac   : > { %v739_v54 = vpop.permute.xlu1 %738  ;;  %v775_v58 = vpop.permute.xlu0 %774 }
 0x2ad   : > { %v917_v56 = vadd.f32 %v3842_v24, %v739_v54  ;;  %1061 = vmax.xlane.f32.xlu1 %v3872_v52  ;;  %v980_v57 = vmax.f32 %v916_v49, %v948_v51  ;;  %v2991_v54 = vld [vmem:[%s3849_s23 + $0x30] sm:$0xff]   ;;  %v926_v55 = vadd.f32 %v3842_v24, %v775_v58  ;;  %v988_v58 = vmax.f32 %v924_v26, %v956_v42 }
 0x2ae   : > { %v3959_v22 = vunpack.c.h.bf16 %v2991_v54 }
 0x2af   : > { %v949_v59 = vmul.f32 0.2, %v917_v56  ;;  %v3880_v60 = vadd.f32 %v3874_v53, %v980_v57  ;;  %v958_v6 = vmul.f32 0.2, %v926_v55 }
 0x2b0   : > { %v743_v62 = vpop.permute.xlu1 %742  ;;  %v779_v7 = vpop.permute.xlu0 %778 }
 0x2b1   : > { %v918_v63 = vadd.f32 %v3842_v24, %v743_v62  ;;  %1063 = vmax.xlane.f32.xlu0 %v3880_v60  ;;  %v981_v0 = vmax.f32 %v917_v56, %v949_v59  ;;  %v927_v49 = vadd.f32 %v3842_v24, %v779_v7  ;;  %v879_v59 = vrot.slane %v3836_v21, %v3833_v19 }
 0x2b2   : > { %v3934_v62 = vadd.f32 %v3915_v39, %v985_v44  ;;  %v990_v23 = vmax.f32 %v926_v55, %v958_v6 }
 0x2b3   : > { %v950_v2 = vmul.f32 0.2, %v918_v63  ;;  %v3888_v3 = vadd.f32 %v3882_v61, %v981_v0  ;;  %v3938_v0 = vunpack.c.l.bf16 %v2991_v54  ;;  %v959_v1 = vmul.f32 0.2, %v927_v49 }
 0x2b4   : > { %v747_v5 = vpop.permute.xlu1 %746  ;;  %v783_v29 = vpop.permute.xlu0 %782  ;;  %v3948_v21 = vrot.slane %v879_v59, %v3830_v14 }
 0x2b5   : > { %v919_v8 = vadd.f32 %v3842_v24, %v747_v5  ;;  %1065 = vmax.xlane.f32.xlu0 %v3888_v3  ;;  %v982_v10 = vmax.f32 %v918_v63, %v950_v2  ;;  %v3936_v63 = vunpack.c.h.bf16 %v2990_v41  ;;  %v989_v5 = vmax.f32 %v925_v28, %v957_v48 }
 0x2b6   : > { %v928_v7 = vadd.f32 %v3842_v24, %v783_v29 }
 0x2b7   : > { %v951_v13 = vmul.f32 0.2, %v919_v8  ;;  %v3897_v15 = vadd.f32 %v3890_v4, %v982_v10  ;;  %v3951_v12 = vadd.f32 %v3936_v63, %v988_v58 }
 0x2b8   : > { %v751_v17 = vpop.permute.xlu1 %750  ;;  %v656_v56 = vpop.permute.xlu0 %655 }
 0x2b9   : > { %v920_v18 = vadd.f32 %v3842_v24, %v751_v17  ;;  %1067 = vmax.xlane.f32.xlu1 %v3897_v15  ;;  %v983_v20 = vmax.f32 %v919_v8, %v951_v13  ;;  %v2992_v8 = vld [vmem:[%s3849_s23 + $0x38] sm:$0xff]   ;;  %v3954_v13 = vadd.f32 %v3938_v0, %v989_v5  ;;  %s2953_s23 = sshll.u32 %s3672_s28, 5  ;;  %s2764_s28 = scalar_lea.sflag [#allocation4], %s3755_s16 }
 0x2ba   : > { %v3956_v17 = vunpack.c.l.bf16 %v2992_v8  ;;  %v3966_v25 = vunpack.c.h.bf16 %v2992_v8 }
 0x2bb   : > { %v952_v32 = vmul.f32 0.2, %v920_v18  ;;  %v3909_v33 = vadd.f32 %v3899_v16, %v983_v20  ;;  %v897_v20 = vadd.f32 %v3948_v21, %v656_v56 }
 0x2bc   : > { %v763_v35 = vpop.permute.xlu1 %762  ;;  %v660_v10 = vpop.permute.xlu0 %659 }
 0x2bd   : > { %v923_v36 = vadd.f32 %v3842_v24, %v763_v35  ;;  %1069 = vmax.xlane.f32.xlu1 %v3909_v33  ;;  %v984_v40 = vmax.f32 %v920_v18, %v952_v32  ;;  %v991_v18 = vmax.f32 %v927_v49, %v959_v1  ;;  %v960_v24 = vmul.f32 0.2, %v928_v7 }
 0x2be   : > { %v929_v28 = vmul.f32 0.2, %v897_v20  ;;  %v898_v29 = vadd.f32 %v3948_v21, %v660_v10  ;;  %v3970_v32 = vadd.f32 %v3959_v22, %v990_v23 }
 0x2bf   : > { %v955_v50 = vmul.f32 0.2, %v923_v36  ;;  %v3925_v51 = vadd.f32 %v3911_v34, %v984_v40  ;;  %v3964_v26 = vadd.f32 %v3956_v17, %v991_v18  ;;  %v992_v35 = vmax.f32 %v928_v7, %v960_v24 }
 0x2c0   : > { %v668_v11 = vpop.permute.xlu1 %667  ;;  %v930_v41 = vmul.f32 0.2, %v898_v29  ;;  %v961_v48 = vmax.f32 %v897_v20, %v929_v28 }
 0x2c1   : > { %1075 = vmax.xlane.f32.xlu1 %v3919_v43  ;;  %1071 = vmax.xlane.f32.xlu0 %v3925_v51  ;;  %v987_v57 = vmax.f32 %v923_v36, %v955_v50  ;;  %v664_v36 = vpop.permute.xlu0 %663  ;;  %v3976_v44 = vadd.f32 %v3966_v25, %v992_v35  ;;  %v900_v54 = vadd.f32 %v3948_v21, %v668_v11 }
 0x2c2   : > { %v899_v42 = vadd.f32 %v3948_v21, %v664_v36  ;;  %v3981_v55 = vadd.f32 %v3853_v30, %v961_v48  ;;  %v962_v56 = vmax.f32 %v898_v29, %v930_v41 }
 0x2c3   : > { %v3941_v2 = vadd.f32 %v3921_v47, %v987_v57  ;;  %v932_v59 = vmul.f32 0.2, %v900_v54 }
 0x2c4   : > { %v676_v40 = vpop.permute.xlu1 %675  ;;  %v931_v50 = vmul.f32 0.2, %v899_v42  ;;  %v3986_v58 = vadd.f32 %v3859_v38, %v962_v56 }
 0x2c5   : > { %1073 = vmax.xlane.f32.xlu0 %v3934_v62  ;;  %1077 = vmax.xlane.f32.xlu1 %v3941_v2  ;;  %v672_v57 = vpop.permute.xlu0 %671  ;;  %v902_v1 = vadd.f32 %v3948_v21, %v676_v40  ;;  %v964_v11 = vmax.f32 %v900_v54, %v932_v59 }
 0x2c6   : > { %v963_v5 = vmax.f32 %v899_v42, %v931_v50 }
 0x2c7   : > { %v934_v7 = vmul.f32 0.2, %v902_v1  ;;  %v3996_v29 = vadd.f32 %v3874_v53, %v964_v11 }
 0x2c8   : > { %v680_v49 = vpop.permute.xlu1 %679  ;;  %v3991_v10 = vadd.f32 %v3867_v46, %v963_v5 }
 0x2c9   : > { %1079 = vmax.xlane.f32.xlu0 %v3951_v12  ;;  %1081 = vmax.xlane.f32.xlu1 %v3954_v13  ;;  %v903_v8 = vadd.f32 %v3948_v21, %v680_v49  ;;  %v684_v18 = vpop.permute.xlu0 %683  ;;  %v966_v20 = vmax.f32 %v902_v1, %v934_v7 }
 0x2ca   : > { %v904_v23 = vadd.f32 %v3948_v21, %v684_v18 }
 0x2cb   : > { %v935_v28 = vmul.f32 0.2, %v903_v8  ;;  %v4003_v41 = vadd.f32 %v3890_v4, %v966_v20  ;;  %v901_v20 = vadd.f32 %v3948_v21, %v672_v57 }
 0x2cc   : > { %v688_v6 = vpop.permute.xlu1 %687  ;;  %v936_v35 = vmul.f32 0.2, %v904_v23 }
 0x2cd   : > { %1085 = vmax.xlane.f32.xlu0 %v3964_v26  ;;  %1083 = vmax.xlane.f32.xlu1 %v3970_v32  ;;  %v967_v36 = vmax.f32 %v903_v8, %v935_v28  ;;  %v905_v40 = vadd.f32 %v3948_v21, %v688_v6  ;;  %v700_v6 = vpop.permute.xlu0 %699 }
 0x2ce   : > { %v968_v48 = vmax.f32 %v904_v23, %v936_v35  ;;  %v908_v7 = vadd.f32 %v3948_v21, %v700_v6 }
 0x2cf   : > { %v937_v49 = vmul.f32 0.2, %v905_v40  ;;  %v4008_v54 = vadd.f32 %v3899_v16, %v967_v36 }
 0x2d0   : > { %v692_v24 = vpop.permute.xlu1 %691  ;;  %v4013_v5 = vadd.f32 %v3911_v34, %v968_v48  ;;  %v940_v23 = vmul.f32 0.2, %v908_v7 }
 0x2d1   : > { %1087 = vmax.xlane.f32.xlu1 %v3976_v44  ;;  %v906_v50 = vadd.f32 %v3948_v21, %v692_v24  ;;  %v969_v56 = vmax.f32 %v905_v40, %v937_v49  ;;  %v716_v28 = vpop.permute.xlu0 %715 }
 0x2d2   : > { %v912_v48 = vadd.f32 %v3948_v21, %v716_v28  ;;  %v972_v49 = vmax.f32 %v908_v7, %v940_v23 }
 0x2d3   : > { %v938_v59 = vmul.f32 0.2, %v906_v50  ;;  %v4018_v18 = vadd.f32 %v3915_v39, %v969_v56 }
 0x2d4   : > { %v696_v42 = vpop.permute.xlu1 %695  ;;  %v4035_v9 = vadd.f32 %v3936_v63, %v972_v49 }
 0x2d5   : > { %1025 = vmax.xlane.f32.xlu1 %v3981_v55  ;;  %v907_v1 = vadd.f32 %v3948_v21, %v696_v42  ;;  %v970_v8 = vmax.f32 %v906_v50, %v938_v59  ;;  %v933_v42 = vmul.f32 0.2, %v901_v20 }
 0x2d7   : > { %v939_v11 = vmul.f32 0.2, %v907_v1  ;;  %v4024_v40 = vadd.f32 %v3905_v27, %v970_v8  ;;  %v965_v6 = vmax.f32 %v901_v20, %v933_v42 }
 0x2d9   : > { %1027 = vmax.xlane.f32.xlu1 %v3986_v58  ;;  %v971_v35 = vmax.f32 %v907_v1, %v939_v11  ;;  %v944_v1 = vmul.f32 0.2, %v912_v48 }
 0x2db   : > { %v4030_v59 = vadd.f32 %v3921_v47, %v971_v35  ;;  %v976_v7 = vmax.f32 %v912_v48, %v944_v1 }
 0x2dd   : > { %1029 = vmax.xlane.f32.xlu1 %v3991_v10 }
 0x2e1   : > { %1031 = vmax.xlane.f32.xlu1 %v3996_v29 }
 0x2e3   : > { %1424 = vrot.lane.b32.xlu0 %v3800_v31, %s3604_s11  ;;  %v704_v31 = vpop.permute.xlu1 %703  ;;  %s3608_s11 = smov 120  }
 0x2e4   : > { %v909_v50 = vadd.f32 %v3948_v21, %v704_v31  ;;  %v4039_v31 = vadd.f32 %v3882_v61, %v965_v6 }
 0x2e5   : > { %1035 = vmax.xlane.f32.xlu1 %v4003_v41 }
 0x2e6   : > { %v941_v11 = vmul.f32 0.2, %v909_v50 }
 0x2e7   : > { %v708_v24 = vpop.permute.xlu1 %707 }
 0x2e8   : > { %v910_v36 = vadd.f32 %v3948_v21, %v708_v24  ;;  %v973_v35 = vmax.f32 %v909_v50, %v941_v11 }
 0x2e9   : > { %1037 = vmax.xlane.f32.xlu1 %v4008_v54 }
 0x2ea   : > { %v942_v56 = vmul.f32 0.2, %v910_v36  ;;  %v4050_v20 = vadd.f32 %v3938_v0, %v973_v35 }
 0x2eb   : > { %v712_v57 = vpop.permute.xlu1 %711 }
 0x2ec   : > { %v974_v8 = vmax.f32 %v910_v36, %v942_v56  ;;  %v911_v24 = vadd.f32 %v3948_v21, %v712_v57  ;;  %v4047_v21 = vadd.f32 %v3966_v25, %v976_v7 }
 0x2ed   : > { %1039 = vmax.xlane.f32.xlu1 %v4013_v5 }
 0x2ee   : > { %v943_v23 = vmul.f32 0.2, %v911_v24  ;;  %v4042_v28 = vadd.f32 %v3959_v22, %v974_v8 }
 0x2f0   : > { %v975_v36 = vmax.f32 %v911_v24, %v943_v23 }
 0x2f1   : > { %1041 = vmax.xlane.f32.xlu1 %v4018_v18 }
 0x2f2   : > { %v4055_v42 = vadd.f32 %v3956_v17, %v975_v36 }
 0x2f5   : > { %1043 = vmax.xlane.f32.xlu1 %v4024_v40 }
 0x2f9   : > { %1045 = vmax.xlane.f32.xlu1 %v4030_v59 }
 0x2fd   : > { %1047 = vmax.xlane.f32.xlu1 %v4035_v9 }
 0x301   : > { %1051 = vmax.xlane.f32.xlu1 %v4042_v28 }
 0x302   : > { %1033 = vmax.xlane.f32.xlu0 %v4039_v31 }
 0x305   : > { %1055 = vmax.xlane.f32.xlu1 %v4047_v21 }
 0x306   : > { %1049 = vmax.xlane.f32.xlu0 %v4050_v20 }
 0x30a   : > { %1053 = vmax.xlane.f32.xlu0 %v4055_v42 }
 0x332   : > { %v1058_v48 = vpop.xlane.xlu0 %1057 }
 0x333   : > { %v1105_v49 = vsub.f32 %v3857_v37, %v1058_v48 }
 0x335   : > { %v1153_v50 = vmul.f32 1.442695, %v1105_v49 }
 0x336   : > { %v1060_v56 = vpop.xlane.xlu1 %1059 }
 0x337   : > { %3309 = vpow2.f32 %v1153_v50  ;;  %v1106_v57 = vsub.f32 %v3865_v45, %v1060_v56 }
 0x339   : > { %v1155_v1 = vmul.f32 1.442695, %v1106_v57 }
 0x33a   : > { %v1062_v6 = vpop.xlane.xlu1 %1061 }
 0x33b   : > { %3311 = vpow2.f32 %v1155_v1  ;;  %v1107_v11 = vsub.f32 %v3872_v52, %v1062_v6 }
 0x33d   : > { %v1157_v8 = vmul.f32 1.442695, %v1107_v11 }
 0x33e   : > { %v1064_v24 = vpop.xlane.xlu0 %1063 }
 0x33f   : > { %3313 = vpow2.f32 %v1157_v8  ;;  %v1108_v7 = vsub.f32 %v3880_v60, %v1064_v24 }
 0x341   : > { %v3310_v23 = vpop.eup %3309  ;;  %v1159_v35 = vmul.f32 1.442695, %v1108_v7 }
 0x342   : > { %v1066_v36 = vpop.xlane.xlu0 %1065  ;;  %1217 = vadd.xlane.f32.xlu0 %v3310_v23 }
 0x343   : > { %3315 = vpow2.f32 %v1159_v35  ;;  %v1109_v37 = vsub.f32 %v3888_v3, %v1066_v36 }
 0x345   : > { %v3312_v48 = vpop.eup %3311  ;;  %v1161_v49 = vmul.f32 1.442695, %v1109_v37 }
 0x346   : > { %1219 = vadd.xlane.f32.xlu1 %v3312_v48  ;;  %v1068_v45 = vpop.xlane.xlu1 %1067  ;;  %v1257_v50 = vpack.c.bf16 %v3312_v48, %v3310_v23 }
 0x347   : > { %3317 = vpow2.f32 %v1161_v49  ;;  %v1110_v52 = vsub.f32 %v3897_v15, %v1068_v45 }
 0x348   : > { %3126 = vmatprep.mubr.bf16.mxu0 %v1257_v50 }
 0x349   : > { %v4064_v56 = vpop.eup %3313  ;;  %v1163_v57 = vmul.f32 1.442695, %v1110_v52 }
 0x34a   : > { %1221 = vadd.xlane.f32.xlu0 %v4064_v56  ;;  %v1070_v60 = vpop.xlane.xlu1 %1069 }
 0x34b   : > { %3319 = vpow2.f32 %v1163_v57  ;;  %v1111_v1 = vsub.f32 %v3909_v33, %v1070_v60 }
 0x34d   : > { %v3316_v6 = vpop.eup %3315  ;;  %v1165_v3 = vmul.f32 1.442695, %v1111_v1 }
 0x34e   : > { %v1072_v11 = vpop.xlane.xlu0 %1071  ;;  %1223 = vadd.xlane.f32.xlu1 %v3316_v6  ;;  %v1076_v8 = vpop.xlane.xlu1 %1075 }
 0x34f   : > { %3321 = vpow2.f32 %v1165_v3  ;;  %v1112_v24 = vsub.f32 %v3925_v51, %v1072_v11  ;;  %v1114_v15 = vsub.f32 %v3919_v43, %v1076_v8 }
 0x351   : > { %v3318_v7 = vpop.eup %3317  ;;  %v1167_v23 = vmul.f32 1.442695, %v1112_v24  ;;  %v1171_v35 = vmul.f32 1.442695, %v1114_v15 }
 0x352   : > { %v1074_v36 = vpop.xlane.xlu0 %1073  ;;  %1225 = vadd.xlane.f32.xlu0 %v3318_v7  ;;  %v1078_v37 = vpop.xlane.xlu1 %1077 }
 0x353   : > { %3323 = vpow2.f32 %v1167_v23  ;;  %v1113_v48 = vsub.f32 %v3934_v62, %v1074_v36  ;;  %v1115_v33 = vsub.f32 %v3941_v2, %v1078_v37 }
 0x354   : > { %3325 = vpow2.f32 %v1171_v35 }
 0x355   : > { %v3320_v49 = vpop.eup %3319  ;;  %v1169_v45 = vmul.f32 1.442695, %v1113_v48  ;;  %v1173_v50 = vmul.f32 1.442695, %v1115_v33  ;;  %v1258_v48 = vpack.c.bf16 %v3316_v6, %v4064_v56 }
 0x356   : > { %v1080_v52 = vpop.xlane.xlu0 %1079  ;;  %1227 = vadd.xlane.f32.xlu1 %v3320_v49  ;;  %v1082_v51 = vpop.xlane.xlu1 %1081 }
 0x357   : > { %3327 = vpow2.f32 %v1169_v45  ;;  %v1116_v43 = vsub.f32 %v3951_v12, %v1080_v52  ;;  %v1117_v57 = vsub.f32 %v3954_v13, %v1082_v51 }
 0x358   : > { %3329 = vpow2.f32 %v1173_v50 }
 0x359   : > { %v3322_v60 = vpop.eup %3321  ;;  %v1175_v1 = vmul.f32 1.442695, %v1116_v43  ;;  %v1177_v62 = vmul.f32 1.442695, %v1117_v57 }
 0x35a   : > { %v1086_v3 = vpop.xlane.xlu0 %1085  ;;  %1229 = vadd.xlane.f32.xlu0 %v3322_v60  ;;  %v1084_v11 = vpop.xlane.xlu1 %1083 }
 0x35b   : > { %3331 = vpow2.f32 %v1175_v1  ;;  %v1119_v2 = vsub.f32 %v3964_v26, %v1086_v3  ;;  %v1118_v8 = vsub.f32 %v3970_v32, %v1084_v11  ;;  %v1259_v32 = vpack.c.bf16 %v3320_v49, %v3318_v7 }
 0x35c   : > { %3333 = vpow2.f32 %v1177_v62 }
 0x35d   : > { %v3324_v24 = vpop.eup %3323  ;;  %v1179_v15 = vmul.f32 1.442695, %v1118_v8  ;;  %v1181_v12 = vmul.f32 1.442695, %v1119_v2 }
 0x35e   : > { %v1425_v23 = vpop.permute.xlu0 %1424  ;;  %1231 = vadd.xlane.f32.xlu1 %v3324_v24  ;;  %v1088_v35 = vpop.xlane.xlu1 %1087  ;;  %v1260_v43 = vpack.c.bf16 %v3324_v24, %v3322_v60 }
 0x35f   : > { %3124 = vmatprep.subr.bf16.mxu0 %v1425_v23  ;;  %v3326_v13 = vpop.eup %3325  ;;  %3335 = vpow2.f32 %v1179_v15  ;;  %v1120_v36 = vsub.f32 %v3976_v44, %v1088_v35 }
 0x360   : > { %3125 = vmatpush3.bf16.msra.mxu0 %v1425_v23  ;;  %3337 = vpow2.f32 %v1181_v12 }
 0x361   : > { %v3328_v37 = vpop.eup %3327  ;;  %v1183_v26 = vmul.f32 1.442695, %v1120_v36 }
 0x362   : > { %1233 = vadd.xlane.f32.xlu0 %v3328_v37  ;;  %1235 = vadd.xlane.f32.xlu1 %v3326_v13  ;;  %v1026_v33 = vpop.xlane.xlu1 %1025  ;;  %v3330_v45 = vpop.eup %3329  ;;  %v1261_v49 = vpack.c.bf16 %v3326_v13, %v3328_v37 }
 0x363   : > { %3127 = vmatmul.mubr.bf16.vlgmr.msra.gmra.mrb[16].mxu0 %v1258_v48  ;;  %3339 = vpow2.f32 %v1183_v26  ;;  %v1089_v50 = vsub.f32 %v3981_v55, %v1026_v33 }
 0x364   : > { %3130 = vmatprep.mubr.bf16.mxu0 %v1259_v32 }
 0x365   : > { %v3332_v52 = vpop.eup %3331  ;;  %v1121_v51 = vmul.f32 1.442695, %v1089_v50 }
 0x366   : > { %1239 = vadd.xlane.f32.xlu1 %v3332_v52  ;;  %1237 = vadd.xlane.f32.xlu0 %v3330_v45  ;;  %v1028_v44 = vpop.xlane.xlu1 %1027  ;;  %v3334_v6 = vpop.eup %3333  ;;  %v1262_v60 = vpack.c.bf16 %v3332_v52, %v3330_v45 }
 0x367   : > { %3341 = vpow2.f32 %v1121_v51  ;;  %v1090_v56 = vsub.f32 %v3986_v58, %v1028_v44 }
 0x369   : > { %v3336_v57 = vpop.eup %3335  ;;  %v1123_v7 = vmul.f32 1.442695, %v1090_v56 }
 0x36a   : > { %1241 = vadd.xlane.f32.xlu0 %v3334_v6  ;;  %1243 = vadd.xlane.f32.xlu1 %v3336_v57  ;;  %v1030_v1 = vpop.xlane.xlu1 %1029  ;;  %v3338_v3 = vpop.eup %3337  ;;  %v1263_v15 = vpack.c.bf16 %v3336_v57, %v3334_v6 }
 0x36b   : > { %3131 = vmatmul.mubr.bf16.gmra.mrb[20].mxu0 %v1260_v43  ;;  %3343 = vpow2.f32 %v1123_v7  ;;  %v1091_v55 = vsub.f32 %v3991_v10, %v1030_v1 }
 0x36c   : > { %3134 = vmatprep.mubr.bf16.mxu0 %v1261_v49 }
 0x36d   : > { %v3340_v62 = vpop.eup %3339  ;;  %v1125_v2 = vmul.f32 1.442695, %v1091_v55 }
 0x36e   : > { %1245 = vadd.xlane.f32.xlu0 %v3338_v3  ;;  %1247 = vadd.xlane.f32.xlu1 %v3340_v62  ;;  %v1032_v11 = vpop.xlane.xlu1 %1031  ;;  %v1264_v37 = vpack.c.bf16 %v3340_v62, %v3338_v3 }
 0x36f   : > { %3345 = vpow2.f32 %v1125_v2  ;;  %v1092_v58 = vsub.f32 %v3996_v29, %v1032_v11 }
 0x371   : > { %v3342_v8 = vpop.eup %3341  ;;  %v1127_v24 = vmul.f32 1.442695, %v1092_v58 }
 0x372   : > { %1185 = vadd.xlane.f32.xlu0 %v3342_v8  ;;  %v1036_v23 = vpop.xlane.xlu1 %1035 }
 0x373   : > { %3135 = vmatmul.mubr.bf16.gmra.mrb[24].mxu0 %v1262_v60  ;;  %3347 = vpow2.f32 %v1127_v24  ;;  %v1094_v10 = vsub.f32 %v4003_v41, %v1036_v23 }
 0x374   : > { %3138 = vmatprep.mubr.bf16.mxu0 %v1263_v15 }
 0x375   : > { %v3344_v12 = vpop.eup %3343  ;;  %v1131_v35 = vmul.f32 1.442695, %v1094_v10 }
 0x376   : > { %1187 = vadd.xlane.f32.xlu1 %v3344_v12  ;;  %v1038_v13 = vpop.xlane.xlu1 %1037  ;;  %v1249_v36 = vpack.c.bf16 %v3344_v12, %v3342_v8 }
 0x377   : > { %3349 = vpow2.f32 %v1131_v35  ;;  %v1095_v57 = vsub.f32 %v4008_v54, %v1038_v13 }
 0x378   : > { %3094 = vmatprep.mubr.bf16.mxu1 %v1249_v36 }
 0x379   : > { %v3346_v29 = vpop.eup %3345  ;;  %v1133_v2 = vmul.f32 1.442695, %v1095_v57 }
 0x37a   : > { %1189 = vadd.xlane.f32.xlu0 %v3346_v29  ;;  %v1040_v48 = vpop.xlane.xlu1 %1039 }
 0x37b   : > { %3139 = vmatmul.mubr.bf16.gmra.mrb[28].mxu0 %v1264_v37  ;;  %v1096_v26 = vsub.f32 %v4013_v5, %v1040_v48 }
 0x37d   : > { %v3348_v32 = vpop.eup %3347  ;;  %v1135_v33 = vmul.f32 1.442695, %v1096_v26 }
 0x37e   : > { %1191 = vadd.xlane.f32.xlu1 %v3348_v32  ;;  %v1042_v45 = vpop.xlane.xlu1 %1041  ;;  %v1250_v41 = vpack.c.bf16 %v3348_v32, %v3346_v29 }
 0x37f   : > { %3351 = vpow2.f32 %v1135_v33  ;;  %v1097_v49 = vsub.f32 %v4018_v18, %v1042_v45 }
 0x380   : > { %3095 = vmatmul.mubr.bf16.vlgmr.msra.gmra.mrb[0].mxu1 %v1250_v41 }
 0x381   : > { %v3350_v50 = vpop.eup %3349  ;;  %v1137_v60 = vmul.f32 1.442695, %v1097_v49 }
 0x382   : > { %1195 = vadd.xlane.f32.xlu1 %v3350_v50  ;;  %v1044_v52 = vpop.xlane.xlu1 %1043 }
 0x383   : > { %v1098_v51 = vsub.f32 %v4024_v40, %v1044_v52 }
 0x385   : > { %v1139_v44 = vmul.f32 1.442695, %v1098_v51 }
 0x386   : > { %v1046_v56 = vpop.xlane.xlu1 %1045 }
 0x387   : > { %3353 = vpow2.f32 %v1139_v44  ;;  %v1099_v24 = vsub.f32 %v4030_v59, %v1046_v56 }
 0x389   : > { %v3352_v6 = vpop.eup %3351  ;;  %v1141_v10 = vmul.f32 1.442695, %v1099_v24 }
 0x38a   : > { %1199 = vadd.xlane.f32.xlu1 %v3352_v6  ;;  %v1048_v43 = vpop.xlane.xlu1 %1047 }
 0x38b   : > { %v1100_v5 = vsub.f32 %v4035_v9, %v1048_v43 }
 0x38d   : > { %v1143_v7 = vmul.f32 1.442695, %v1100_v5  ;;  %v3260_v5 = vld [vmem:[%s4448_s5 + $0x8] sm:$0xff]  }
 0x38e   : > { %v1052_v1 = vpop.xlane.xlu1 %1051 }
 0x38f   : > { %v1034_v55 = vpop.xlane.xlu0 %1033  ;;  %3355 = vpow2.f32 %v1143_v7  ;;  %v1102_v3 = vsub.f32 %v4042_v28, %v1052_v1 }
 0x390   : > { %v1093_v40 = vsub.f32 %v4039_v31, %v1034_v55 }
 0x391   : > { %v3354_v62 = vpop.eup %3353  ;;  %v1147_v11 = vmul.f32 1.442695, %v1102_v3 }
 0x392   : > { %v1129_v58 = vmul.f32 1.442695, %v1093_v40  ;;  %1203 = vadd.xlane.f32.xlu1 %v3354_v62  ;;  %v1056_v8 = vpop.xlane.xlu1 %1055 }
 0x393   : > { %v1050_v9 = vpop.xlane.xlu0 %1049  ;;  %3357 = vpow2.f32 %v1147_v11  ;;  %v1104_v54 = vsub.f32 %v4047_v21, %v1056_v8 }
 0x394   : > { %3359 = vpow2.f32 %v1129_v58  ;;  %v1101_v18 = vsub.f32 %v4050_v20, %v1050_v9 }
 0x395   : > { %3361 = vpow2.f32 %v1133_v2  ;;  %v1151_v28 = vmul.f32 1.442695, %v1104_v54 }
 0x396   : > { %3363 = vpow2.f32 %v1137_v60  ;;  %v1145_v31 = vmul.f32 1.442695, %v1101_v18 }
 0x397   : > { %3365 = vpow2.f32 %v1151_v28  ;;  %v1054_v15 = vpop.xlane.xlu0 %1053 }
 0x398   : > { %v1103_v12 = vsub.f32 %v4055_v42, %v1054_v15  ;;  %3367 = vpow2.f32 %v1145_v31 }
 0x399   : > { %v3356_v23 = vpop.eup %3355  ;;  %3369 = vpow2.f32 %v1141_v10 }
 0x39a   : > { %1207 = vadd.xlane.f32.xlu1 %v3356_v23  ;;  %v1149_v20 = vmul.f32 1.442695, %v1103_v12 }
 0x39c   : > { %3371 = vpow2.f32 %v1149_v20 }
 0x39d   : > { %v3358_v35 = vpop.eup %3357 }
 0x39e   : > { %v3360_v21 = vpop.eup %3359  ;;  %1211 = vadd.xlane.f32.xlu1 %v3358_v35 }
 0x39f   : > { %v3362_v13 = vpop.eup %3361  ;;  %1193 = vadd.xlane.f32.xlu0 %v3360_v21  ;;  %v1251_v36 = vpack.c.bf16 %v3350_v50, %v3360_v21  ;;  %v3259_v50 = vld [vmem:[%s4448_s5] sm:$0xff]  }
 0x3a0   : > { %v3364_v59 = vpop.eup %3363  ;;  %v1252_v37 = vpack.c.bf16 %v3352_v6, %v3362_v13  ;;  %3142 = vmatprep.subr.bf16.mxu1 %v3259_v50 }
 0x3a1   : > { %v3366_v29 = vpop.eup %3365  ;;  %3098 = vmatprep.mubr.bf16.mxu1 %v1251_v36  ;;  %v1253_v48 = vpack.c.bf16 %v3354_v62, %v3364_v59  ;;  %3143 = vmatpush3.bf16.msra.mxu1 %v3259_v50 }
 0x3a2   : > { %1215 = vadd.xlane.f32.xlu1 %v3366_v29  ;;  %3099 = vmatmul.mubr.bf16.gmra.mrb[4].mxu1 %v1252_v37  ;;  %v3368_v42 = vpop.eup %3367 }
 0x3a3   : > { %1197 = vadd.xlane.f32.xlu0 %v3362_v13  ;;  %3102 = vmatprep.mubr.bf16.mxu1 %v1253_v48  ;;  %v3370_v26 = vpop.eup %3369  ;;  %v1255_v33 = vpack.c.bf16 %v3358_v35, %v3368_v42 }
 0x3a4   : > { %v1254_v32 = vpack.c.bf16 %v3356_v23, %v3370_v26  ;;  %3144 = vmatprep.subr.bf16.mxu1 %v3260_v5 }
 0x3a5   : > { %3145 = vmatpush3.bf16.msra.mxu1 %v3260_v5 }
 0x3a6   : > { %v3372_v45 = vpop.eup %3371 }
 0x3a7   : > { %1201 = vadd.xlane.f32.xlu0 %v3364_v59  ;;  %v1256_v41 = vpack.c.bf16 %v3366_v29, %v3372_v45 }
 0x3aa   : > { %3103 = vmatmul.mubr.bf16.gmra.mrb[8].mxu1 %v1254_v32 }
 0x3ab   : > { %1205 = vadd.xlane.f32.xlu0 %v3370_v26  ;;  %3106 = vmatprep.mubr.bf16.mxu1 %v1255_v33 }
 0x3af   : > { %1209 = vadd.xlane.f32.xlu0 %v3368_v42 }
 0x3b2   : > { %3107 = vmatmul.mubr.bf16.gmra.mrb[12].mxu1 %v1256_v41 }
 0x3b3   : > { %1213 = vadd.xlane.f32.xlu0 %v3372_v45 }
 0x3cf   : > { %v1218_v52 = vpop.xlane.xlu0 %1217 }
 0x3d3   : > { %v1220_v51 = vpop.xlane.xlu1 %1219 }
 0x3d7   : > { %v1222_v44 = vpop.xlane.xlu0 %1221 }
 0x3d8   : > { %3373 = vrcp.f32 %v1222_v44 }
 0x3d9   : > { %3375 = vrcp.f32 %v1218_v52 }
 0x3da   : > { %3377 = vrcp.f32 %v1220_v51 }
 0x3db   : > { %v1224_v56 = vpop.xlane.xlu1 %1223 }
 0x3dc   : > { %3379 = vrcp.f32 %v1224_v56 }
 0x3df   : > { %v1226_v6 = vpop.xlane.xlu0 %1225 }
 0x3e0   : > { %3381 = vrcp.f32 %v1226_v6 }
 0x3e2   : > { %v3374_v1 = vpop.eup %3373 }
 0x3e3   : > { %v1228_v43 = vpop.xlane.xlu1 %1227  ;;  %v3376_v3 = vpop.eup %3375 }
 0x3e4   : > { %3383 = vrcp.f32 %v1228_v43  ;;  %v3378_v60 = vpop.eup %3377 }
 0x3e6   : > { %v3380_v24 = vpop.eup %3379 }
 0x3e7   : > { %v1230_v57 = vpop.xlane.xlu0 %1229 }
 0x3e8   : > { %3385 = vrcp.f32 %v1230_v57 }
 0x3ea   : > { %v3382_v31 = vpop.eup %3381 }
 0x3eb   : > { %v1232_v7 = vpop.xlane.xlu1 %1231 }
 0x3ec   : > { %3387 = vrcp.f32 %v1232_v7 }
 0x3ee   : > { %v3384_v21 = vpop.eup %3383 }
 0x3ef   : > { %v1234_v49 = vpop.xlane.xlu0 %1233  ;;  %v1236_v40 = vpop.xlane.xlu1 %1235 }
 0x3f0   : > { %3389 = vrcp.f32 %v1234_v49 }
 0x3f1   : > { %3391 = vrcp.f32 %v1236_v40 }
 0x3f2   : > { %v3386_v36 = vpop.eup %3385 }
 0x3f3   : > { %v1238_v9 = vpop.xlane.xlu0 %1237  ;;  %v1240_v18 = vpop.xlane.xlu1 %1239 }
 0x3f4   : > { %3393 = vrcp.f32 %v1238_v9 }
 0x3f5   : > { %3395 = vrcp.f32 %v1240_v18 }
 0x3f6   : > { %v3388_v29 = vpop.eup %3387 }
 0x3f7   : > { %v1242_v10 = vpop.xlane.xlu0 %1241  ;;  %v1244_v59 = vpop.xlane.xlu1 %1243 }
 0x3f8   : > { %3397 = vrcp.f32 %v1242_v10 }
 0x3f9   : > { %3399 = vrcp.f32 %v1244_v59 }
 0x3fa   : > { %v3390_v26 = vpop.eup %3389 }
 0x3fb   : > { %v1246_v48 = vpop.xlane.xlu0 %1245  ;;  %v3392_v50 = vpop.eup %3391 }
 0x3fc   : > { %3401 = vrcp.f32 %v1246_v48  ;;  %v1248_v52 = vpop.xlane.xlu1 %1247 }
 0x3fd   : > { %3403 = vrcp.f32 %v1248_v52 }
 0x3fe   : > { %v3394_v56 = vpop.eup %3393 }
 0x3ff   : > { %v3396_v43 = vpop.eup %3395 }
 0x402   : > { %v3398_v57 = vpop.eup %3397 }
 0x436   : > { %v3128_v55 = vpop.f32.mrb[16].mxu0 }
 0x437   : > { %v1536_v62 = vmul.f32 %v3374_v1, %v3128_v55  ;;  %v1468_v2 = vpop.f32.mrb[17].mxu0 }
 0x438   : > { %v1532_v11 = vmul.f32 %v3376_v3, %v1468_v2  ;;  %v3129_v58 = vpop.f32.mrb[18].mxu0  ;;  %v3400_v3 = vpop.eup %3399 }
 0x439   : > { %v1471_v8 = vpop.f32.mrb[19].mxu0  ;;  %1583 = vrot.lane.b32.xlu1 %v1536_v62, %s3606_s21  ;;  %v1538_v15 = vmul.f32 %v3380_v24, %v3129_v58  ;;  %v3402_v2 = vpop.eup %3401 }
 0x43a   : > { %v1534_v54 = vmul.f32 %v3378_v60, %v1471_v8  ;;  %1579 = vrot.lane.b32.xlu0 %v1532_v11, %s3606_s21  ;;  %v3404_v8 = vpop.eup %3403 }
 0x43d   : > { %1581 = vrot.lane.b32.xlu1 %v1534_v54, %s3606_s21 }
 0x43e   : > { %v3132_v28 = vpop.f32.mrb[20].mxu0 }
 0x43f   : > { %v1484_v23 = vpop.f32.mrb[21].mxu0  ;;  %v1544_v37 = vmul.f32 %v3386_v36, %v3132_v28 }
 0x440   : > { %v1540_v12 = vmul.f32 %v3382_v31, %v1484_v23  ;;  %v3133_v35 = vpop.f32.mrb[22].mxu0 }
 0x441   : > { %v1487_v13 = vpop.f32.mrb[23].mxu0  ;;  %1585 = vrot.lane.b32.xlu1 %v1538_v15, %s3606_s21  ;;  %v1546_v32 = vmul.f32 %v3388_v29, %v3133_v35 }
 0x442   : > { %v1542_v20 = vmul.f32 %v3384_v21, %v1487_v13  ;;  %1587 = vrot.lane.b32.xlu0 %v1540_v12, %s3606_s21  ;;  %v1186_v21 = vpop.xlane.xlu0 %1185  ;;  %v1188_v13 = vpop.xlane.xlu1 %1187 }
 0x443   : > { %3405 = vrcp.f32 %v1186_v21 }
 0x444   : > { %3407 = vrcp.f32 %v1188_v13 }
 0x445   : > { %1589 = vrot.lane.b32.xlu1 %v1542_v20, %s3606_s21 }
 0x446   : > { %v3136_v42 = vpop.f32.mrb[24].mxu0  ;;  %1591 = vrot.lane.b32.xlu0 %v1544_v37, %s3606_s21  ;;  %v1190_v20 = vpop.xlane.xlu0 %1189 }
 0x447   : > { %v1500_v33 = vpop.f32.mrb[25].mxu0  ;;  %v1552_v6 = vmul.f32 %v3394_v56, %v3136_v42  ;;  %v1192_v29 = vpop.xlane.xlu1 %1191  ;;  %3409 = vrcp.f32 %v1190_v20 }
 0x448   : > { %v1548_v45 = vmul.f32 %v3390_v26, %v1500_v33  ;;  %v3137_v41 = vpop.f32.mrb[26].mxu0  ;;  %3411 = vrcp.f32 %v1192_v29 }
 0x449   : > { %v1503_v51 = vpop.f32.mrb[27].mxu0  ;;  %1593 = vrot.lane.b32.xlu1 %v1546_v32, %s3606_s21  ;;  %v1554_v7 = vmul.f32 %v3396_v43, %v3137_v41 }
 0x44a   : > { %v1550_v44 = vmul.f32 %v3392_v50, %v1503_v51  ;;  %1595 = vrot.lane.b32.xlu0 %v1548_v45, %s3606_s21  ;;  %v1194_v42 = vpop.xlane.xlu0 %1193 }
 0x44b   : > { %v1196_v26 = vpop.xlane.xlu1 %1195  ;;  %3413 = vrcp.f32 %v1194_v42 }
 0x44c   : > { %3415 = vrcp.f32 %v1196_v26 }
 0x44d   : > { %1597 = vrot.lane.b32.xlu1 %v1550_v44, %s3606_s21  ;;  %v3406_v43 = vpop.eup %3405 }
 0x44e   : > { %v3140_v5 = vpop.f32.mrb[28].mxu0  ;;  %1599 = vrot.lane.b32.xlu0 %v1552_v6, %s3606_s21  ;;  %v1198_v32 = vpop.xlane.xlu0 %1197 }
 0x44f   : > { %v1516_v49 = vpop.f32.mrb[29].mxu0  ;;  %v1560_v11 = vmul.f32 %v3402_v2, %v3140_v5  ;;  %v1200_v33 = vpop.xlane.xlu1 %1199  ;;  %3417 = vrcp.f32 %v1198_v32 }
 0x450   : > { %v1556_v1 = vmul.f32 %v3398_v57, %v1516_v49  ;;  %v3141_v55 = vpop.f32.mrb[30].mxu0  ;;  %v4145_v49 = vld [vmem:[%s4447_s4] ss:$0 sm:$0xff]  ;;  %3419 = vrcp.f32 %v1200_v33 }
 0x451   : > { %v1519_v40 = vpop.f32.mrb[31].mxu0  ;;  %1601 = vrot.lane.b32.xlu1 %v1554_v7, %s3606_s21  ;;  %v1562_v54 = vmul.f32 %v3404_v8, %v3141_v55  ;;  %v3408_v7 = vpop.eup %3407 }
 0x452   : > { %v1558_v62 = vmul.f32 %v3400_v3, %v1519_v40  ;;  %1603 = vrot.lane.b32.xlu0 %v1556_v1, %s3606_s21  ;;  %v1202_v45 = vpop.xlane.xlu0 %1201  ;;  %v3410_v55 = vpop.eup %3409 }
 0x453   : > { %v3096_v58 = vpop.f32.mrb[0].mxu1  ;;  %v1204_v41 = vpop.xlane.xlu1 %1203  ;;  %3421 = vrcp.f32 %v1202_v45 }
 0x454   : > { %v1307_v60 = vpop.f32.mrb[1].mxu1  ;;  %v1375_v40 = vmul.f32 %v3410_v55, %v3096_v58  ;;  %3423 = vrcp.f32 %v1204_v41 }
 0x455   : > { %1605 = vrot.lane.b32.xlu1 %v1558_v62, %s3606_s21  ;;  %v3097_v9 = vpop.f32.mrb[2].mxu1  ;;  %v1371_v5 = vmul.f32 %v3406_v43, %v1307_v60 }
 0x456   : > { %1607 = vrot.lane.b32.xlu0 %v1560_v11, %s3606_s21  ;;  %v1310_v18 = vpop.f32.mrb[3].mxu1  ;;  %v1206_v52 = vpop.xlane.xlu0 %1205 }
 0x457   : > { %v1208_v50 = vpop.xlane.xlu1 %1207  ;;  %v1373_v62 = vmul.f32 %v3408_v7, %v1310_v18  ;;  %3425 = vrcp.f32 %v1206_v52 }
 0x458   : > { %3427 = vrcp.f32 %v1208_v50 }
 0x459   : > { %1609 = vrot.lane.b32.xlu1 %v1562_v54, %s3606_s21  ;;  %v3412_v54 = vpop.eup %3411  ;;  %s4399_s21 = scalar_lea.hbm %s4450_s7, %s2953_s23 }
 0x45a   : > { %v1210_v44 = vpop.xlane.xlu0 %1209  ;;  %v3414_v13 = vpop.eup %3413  ;;  %v1377_v20 = vmul.f32 %v3412_v54, %v3097_v9 }
 0x45b   : > { %v1212_v51 = vpop.xlane.xlu1 %1211  ;;  %v3416_v45 = vpop.eup %3415  ;;  %3429 = vrcp.f32 %v1210_v44 }
 0x45c   : > { %v3418_v7 = vpop.eup %3417  ;;  %3431 = vrcp.f32 %v1212_v51 }
 0x45e   : > { %v4140_v6 = vpop.xlane.xlu0 %1213 }
 0x45f   : > { %v4138_v56 = vpop.xlane.xlu1 %1215  ;;  %3433 = vrcp.f32 %v4140_v6 }
 0x460   : > { %3435 = vrcp.f32 %v4138_v56 }
 0x475   : > { %v4116_v24 = vpop.f32.mrb[4].mxu1 }
 0x476   : > { %v1323_v28 = vpop.f32.mrb[5].mxu1 }
 0x477   : > { %v4118_v31 = vpop.f32.mrb[6].mxu1  ;;  %v1379_v29 = vmul.f32 %v3414_v13, %v1323_v28  ;;  %v1383_v28 = vmul.f32 %v3418_v7, %v4116_v24 }
 0x478   : > { %v4120_v15 = vpop.f32.mrb[7].mxu1 }
 0x479   : > { %v1381_v9 = vmul.f32 %v3416_v45, %v4120_v15 }
 0x47d   : > { %v4122_v23 = vpop.f32.mrb[8].mxu1 }
 0x47e   : > { %v4124_v10 = vpop.f32.mrb[9].mxu1 }
 0x47f   : > { %v4126_v12 = vpop.f32.mrb[10].mxu1 }
 0x480   : > { %v4128_v35 = vpop.f32.mrb[11].mxu1 }
 0x485   : > { %v4130_v36 = vpop.f32.mrb[12].mxu1 }
 0x486   : > { %v4132_v59 = vpop.f32.mrb[13].mxu1 }
 0x487   : > { %v4134_v37 = vpop.f32.mrb[14].mxu1 }
 0x488   : > { %v4136_v48 = vpop.f32.mrb[15].mxu1 }
 0x4ab   : > { %v1584_v57 = vpop.permute.xlu1 %1583 }
 0x4ac   : > { %v1580_v1 = vpop.permute.xlu0 %1579  ;;  %v1630_v60 = vsel %vm1627_vm2, %v1375_v40, %v1584_v57 }
 0x4ad   : > { %v1628_v3 = vsel %vm1627_vm2, %v1371_v5, %v1580_v1  ;;  %v1652_v42 = vadd.f32 %v4145_v49, %v1630_v60 }
 0x4ae   : > { %v1650_v2 = vadd.f32 %v4145_v49, %v1628_v3 }
 0x4af   : > { %v1582_v11 = vpop.permute.xlu1 %1581  ;;  %v1668_v41 = vmax.f32 %v1652_v42, 0.0 }
 0x4b0   : > { %v1629_v8 = vsel %vm1627_vm2, %v1373_v62, %v1582_v11  ;;  %v1666_v58 = vmax.f32 %v1650_v2, 0.0  ;;  %v3420_v62 = vpop.eup %3419 }
 0x4b1   : > { %v1651_v21 = vadd.f32 %v4145_v49, %v1629_v8  ;;  %v3422_v15 = vpop.eup %3421  ;;  %v1385_v24 = vmul.f32 %v3420_v62, %v4118_v31 }
 0x4b2   : > { %v1387_v60 = vmul.f32 %v3422_v15, %v4124_v10  ;;  %v3424_v13 = vpop.eup %3423 }
 0x4b3   : > { %v1667_v18 = vmax.f32 %v1651_v21, 0.0  ;;  %v1586_v26 = vpop.permute.xlu1 %1585  ;;  %v1389_v10 = vmul.f32 %v3424_v13, %v4128_v35 }
 0x4b4   : > { %v1631_v32 = vsel %vm1627_vm2, %v1377_v20, %v1586_v26  ;;  %v1588_v33 = vpop.permute.xlu0 %1587 }
 0x4b5   : > { %v1682_v43 = vpack.c.bf16 %v1667_v18, %v1666_v58  ;;  %v1653_v5 = vadd.f32 %v4145_v49, %v1631_v32  ;;  %v1632_v57 = vsel %vm1627_vm2, %v1379_v29, %v1588_v33  ;;  %v3426_v58 = vpop.eup %3425 }
 0x4b6   : > { %v1654_v52 = vadd.f32 %v4145_v49, %v1632_v57  ;;  %v1391_v18 = vmul.f32 %v3426_v58, %v4122_v23  ;;  %v3428_v45 = vpop.eup %3427 }
 0x4b7   : > { %v1669_v1 = vmax.f32 %v1653_v5, 0.0  ;;  %v1590_v55 = vpop.permute.xlu1 %1589  ;;  %3146 = vmatprep.mubr.msk.bf16.mxu1 %vm1707_vm3, %v1682_v43  ;;  %v1393_v35 = vmul.f32 %v3428_v45, %v4126_v12 }
 0x4b8   : > { %v1633_v3 = vsel %vm1627_vm2, %v1381_v9, %v1590_v55  ;;  %v1592_v40 = vpop.permute.xlu0 %1591  ;;  %v1670_v8 = vmax.f32 %v1654_v52, 0.0  ;;  %v3430_v9 = vpop.eup %3429 }
 0x4b9   : > { %v1683_v2 = vpack.c.bf16 %v1669_v1, %v1668_v41  ;;  %v1655_v11 = vadd.f32 %v4145_v49, %v1633_v3  ;;  %v1634_v50 = vsel %vm1627_vm2, %v1383_v28, %v1592_v40  ;;  %v1395_v23 = vmul.f32 %v3430_v9, %v4132_v59  ;;  %v3432_v55 = vpop.eup %3431 }
 0x4ba   : > { %v1656_v21 = vadd.f32 %v4145_v49, %v1634_v50  ;;  %v3434_v50 = vpop.eup %3433  ;;  %v1397_v12 = vmul.f32 %v3432_v55, %v4136_v48 }
 0x4bb   : > { %v1671_v54 = vmax.f32 %v1655_v11, 0.0  ;;  %v1594_v44 = vpop.permute.xlu1 %1593  ;;  %3147 = vmatmul.mubr.msk.bf16.vlgmr.msra.gmra.mrb[16].mxu1 %vm1707_vm3, %v1683_v2  ;;  %v1399_v59 = vmul.f32 %v3434_v50, %v4130_v36 }
 0x4bc   : > { %v1635_v20 = vsel %vm1627_vm2, %v1385_v24, %v1594_v44  ;;  %v1596_v29 = vpop.permute.xlu0 %1595  ;;  %v1672_v26 = vmax.f32 %v1656_v21, 0.0 }
 0x4bd   : > { %v1684_v42 = vpack.c.bf16 %v1671_v54, %v1670_v8  ;;  %v1657_v51 = vadd.f32 %v4145_v49, %v1635_v20  ;;  %v1636_v31 = vsel %vm1627_vm2, %v1387_v60, %v1596_v29  ;;  %v3436_v54 = vpop.eup %3435 }
 0x4be   : > { %v1658_v33 = vadd.f32 %v4145_v49, %v1636_v31  ;;  %v1401_v48 = vmul.f32 %v3436_v54, %v4134_v37 }
 0x4bf   : > { %v1673_v32 = vmax.f32 %v1657_v51, 0.0  ;;  %v1598_v6 = vpop.permute.xlu1 %1597  ;;  %3150 = vmatprep.mubr.msk.bf16.mxu1 %vm1707_vm3, %v1684_v42 }
 0x4c0   : > { %v1637_v43 = vsel %vm1627_vm2, %v1389_v10, %v1598_v6  ;;  %v1600_v5 = vpop.permute.xlu0 %1599  ;;  %v1674_v28 = vmax.f32 %v1658_v33, 0.0 }
 0x4c1   : > { %v1685_v57 = vpack.c.bf16 %v1673_v32, %v1672_v26  ;;  %v1659_v7 = vadd.f32 %v4145_v49, %v1637_v43  ;;  %v1638_v56 = vsel %vm1627_vm2, %v1391_v18, %v1600_v5 }
 0x4c2   : > { %v1660_v1 = vadd.f32 %v4145_v49, %v1638_v56 }
 0x4c3   : > { %v1675_v41 = vmax.f32 %v1659_v7, 0.0  ;;  %v1602_v52 = vpop.permute.xlu1 %1601  ;;  %3151 = vmatmul.mubr.msk.bf16.gmra.mrb[20].mxu1 %vm1707_vm3, %v1685_v57 }
 0x4c4   : > { %v1639_v3 = vsel %vm1627_vm2, %v1393_v35, %v1602_v52  ;;  %v1604_v40 = vpop.permute.xlu0 %1603  ;;  %v1676_v15 = vmax.f32 %v1660_v1, 0.0 }
 0x4c5   : > { %v1686_v62 = vpack.c.bf16 %v1675_v41, %v1674_v28  ;;  %v1661_v2 = vadd.f32 %v4145_v49, %v1639_v3  ;;  %v1640_v11 = vsel %vm1627_vm2, %v1395_v23, %v1604_v40 }
 0x4c6   : > { %v1662_v60 = vadd.f32 %v4145_v49, %v1640_v11 }
 0x4c7   : > { %v1677_v24 = vmax.f32 %v1661_v2, 0.0  ;;  %v1606_v8 = vpop.permute.xlu1 %1605  ;;  %3154 = vmatprep.mubr.msk.bf16.mxu1 %vm1707_vm3, %v1686_v62 }
 0x4c8   : > { %v1641_v21 = vsel %vm1627_vm2, %v1397_v12, %v1606_v8  ;;  %v1608_v44 = vpop.permute.xlu0 %1607  ;;  %v1678_v42 = vmax.f32 %v1662_v60, 0.0 }
 0x4c9   : > { %v1687_v13 = vpack.c.bf16 %v1677_v24, %v1676_v15  ;;  %v1663_v20 = vadd.f32 %v4145_v49, %v1641_v21  ;;  %v1642_v29 = vsel %vm1627_vm2, %v1399_v59, %v1608_v44 }
 0x4ca   : > { %v1664_v51 = vadd.f32 %v4145_v49, %v1642_v29 }
 0x4cb   : > { %v1679_v36 = vmax.f32 %v1663_v20, 0.0  ;;  %v1610_v31 = vpop.permute.xlu1 %1609  ;;  %3155 = vmatmul.mubr.msk.bf16.gmra.mrb[24].mxu1 %vm1707_vm3, %v1687_v13 }
 0x4cc   : > { %v1643_v58 = vsel %vm1627_vm2, %v1401_v48, %v1610_v31  ;;  %v1680_v26 = vmax.f32 %v1664_v51, 0.0 }
 0x4cd   : > { %v1688_v10 = vpack.c.bf16 %v1679_v36, %v1678_v42  ;;  %v1665_v18 = vadd.f32 %v4145_v49, %v1643_v58 }
 0x4cf   : > { %v1681_v32 = vmax.f32 %v1665_v18, 0.0  ;;  %3158 = vmatprep.mubr.msk.bf16.mxu1 %vm1707_vm3, %v1688_v10 }
 0x4d1   : > { %v1689_v33 = vpack.c.bf16 %v1681_v32, %v1680_v26 }
 0x4d3   : > { %3159 = vmatmul.mubr.msk.bf16.gmra.mrb[28].mxu1 %vm1707_vm3, %v1689_v33 }
 0x58e   : > { %v3148_v37 = vpop.f32.mrb[16].mxu1 }
 0x58f   : > { %1849 = vrot.lane.b32.xlu0 %v3148_v37, %s3607_s8  ;;  %v1766_v6 = vpop.f32.mrb[17].mxu1 }
 0x590   : > { %v3149_v45 = vpop.f32.mrb[18].mxu1 }
 0x591   : > { %v2261_v43 = vpack.c.bf16 %v3149_v45, %v3148_v37  ;;  %1851 = vrot.lane.b32.xlu1 %v3149_v45, %s3607_s8  ;;  %v1769_v5 = vpop.f32.mrb[19].mxu1 }
 0x592   : > { %v2260_v57 = vpack.c.bf16 %v1769_v5, %v1766_v6 }
 0x593   : > { %1996 = vrot.lane.b32.xlu0 %v3148_v37, %s3608_s11 }
 0x594   : > { %3162 = vmatprep.subr.bf16.mxu0 %v2260_v57 }
 0x595   : > { %1998 = vrot.lane.b32.xlu1 %v3149_v45, %s3608_s11  ;;  %3163 = vmatpush3.bf16.msra.mxu0 %v2260_v57 }
 0x596   : > { %v3152_v49 = vpop.f32.mrb[20].mxu1  ;;  %3164 = vmatprep.subr.bf16.mxu0 %v2261_v43 }
 0x597   : > { %1845 = vrot.lane.b32.xlu0 %v1766_v6, %s3607_s8  ;;  %v1782_v7 = vpop.f32.mrb[21].mxu1 }
 0x598   : > { %v3153_v56 = vpop.f32.mrb[22].mxu1 }
 0x599   : > { %v2263_v9 = vpack.c.bf16 %v3153_v56, %v3152_v49  ;;  %1847 = vrot.lane.b32.xlu1 %v1769_v5, %s3607_s8  ;;  %v1785_v35 = vpop.f32.mrb[23].mxu1  ;;  %3165 = vmatpush3.bf16.msra.mxu0 %v2261_v43 }
 0x59a   : > { %v2262_v23 = vpack.c.bf16 %v1785_v35, %v1782_v7 }
 0x59b   : > { %1992 = vrot.lane.b32.xlu0 %v1766_v6, %s3608_s11 }
 0x59c   : > { %3166 = vmatprep.subr.bf16.mxu0 %v2262_v23 }
 0x59d   : > { %1994 = vrot.lane.b32.xlu1 %v1769_v5, %s3608_s11  ;;  %3167 = vmatpush3.bf16.msra.mxu0 %v2262_v23 }
 0x59e   : > { %v3156_v28 = vpop.f32.mrb[24].mxu1  ;;  %3168 = vmatprep.subr.bf16.mxu0 %v2263_v9 }
 0x59f   : > { %1857 = vrot.lane.b32.xlu0 %v3152_v49, %s3607_s8  ;;  %v1798_v41 = vpop.f32.mrb[25].mxu1 }
 0x5a0   : > { %v3157_v1 = vpop.f32.mrb[26].mxu1 }
 0x5a1   : > { %v2265_v52 = vpack.c.bf16 %v3157_v1, %v3156_v28  ;;  %1859 = vrot.lane.b32.xlu1 %v3153_v56, %s3607_s8  ;;  %v1801_v55 = vpop.f32.mrb[27].mxu1  ;;  %3169 = vmatpush3.bf16.msra.mxu0 %v2263_v9 }
 0x5a2   : > { %v2264_v3 = vpack.c.bf16 %v1801_v55, %v1798_v41 }
 0x5a3   : > { %2004 = vrot.lane.b32.xlu0 %v3152_v49, %s3608_s11 }
 0x5a4   : > { %3170 = vmatprep.subr.bf16.mxu0 %v2264_v3 }
 0x5a5   : > { %2006 = vrot.lane.b32.xlu1 %v3153_v56, %s3608_s11  ;;  %3171 = vmatpush3.bf16.msra.mxu0 %v2264_v3 }
 0x5a6   : > { %v3160_v40 = vpop.f32.mrb[28].mxu1  ;;  %3172 = vmatprep.subr.bf16.mxu0 %v2265_v52 }
 0x5a7   : > { %1853 = vrot.lane.b32.xlu0 %v1782_v7, %s3607_s8  ;;  %v1814_v62 = vpop.f32.mrb[29].mxu1 }
 0x5a8   : > { %v3161_v2 = vpop.f32.mrb[30].mxu1 }
 0x5a9   : > { %v2267_v11 = vpack.c.bf16 %v3161_v2, %v3160_v40  ;;  %1855 = vrot.lane.b32.xlu1 %v1785_v35, %s3607_s8  ;;  %v1817_v50 = vpop.f32.mrb[31].mxu1  ;;  %3173 = vmatpush3.bf16.msra.mxu0 %v2265_v52 }
 0x5aa   : > { %v2266_v12 = vpack.c.bf16 %v1817_v50, %v1814_v62 }
 0x5ab   : > { %2000 = vrot.lane.b32.xlu0 %v1782_v7, %s3608_s11 }
 0x5ac   : > { %3174 = vmatprep.subr.bf16.mxu0 %v2266_v12 }
 0x5ad   : > { %2002 = vrot.lane.b32.xlu1 %v1785_v35, %s3608_s11  ;;  %3175 = vmatpush3.bf16.msra.mxu0 %v2266_v12 }
 0x5ae   : > { %3176 = vmatprep.subr.bf16.mxu0 %v2267_v11 }
 0x5af   : > { %1865 = vrot.lane.b32.xlu0 %v3156_v28, %s3607_s8 }
 0x5b1   : > { %1867 = vrot.lane.b32.xlu1 %v3157_v1, %s3607_s8  ;;  %3177 = vmatpush3.bf16.msra.mxu0 %v2267_v11 }
 0x5b3   : > { %2012 = vrot.lane.b32.xlu0 %v3156_v28, %s3608_s11 }
 0x5b5   : > { %2014 = vrot.lane.b32.xlu1 %v3157_v1, %s3608_s11 }
 0x5b7   : > { %1861 = vrot.lane.b32.xlu0 %v1798_v41, %s3607_s8 }
 0x5b9   : > { %1863 = vrot.lane.b32.xlu1 %v1801_v55, %s3607_s8 }
 0x5bb   : > { %2008 = vrot.lane.b32.xlu0 %v1798_v41, %s3608_s11 }
 0x5bd   : > { %2010 = vrot.lane.b32.xlu1 %v1801_v55, %s3608_s11 }
 0x5bf   : > { %1873 = vrot.lane.b32.xlu0 %v3160_v40, %s3607_s8 }
 0x5c1   : > { %1875 = vrot.lane.b32.xlu1 %v3161_v2, %s3607_s8 }
 0x5c3   : > { %2020 = vrot.lane.b32.xlu0 %v3160_v40, %s3608_s11 }
 0x5c5   : > { %1871 = vrot.lane.b32.xlu1 %v1817_v50, %s3607_s8 }
 0x5c7   : > { %1869 = vrot.lane.b32.xlu0 %v1814_v62, %s3607_s8  ;;  %s3535_s8 = sshll.u32 %s3610_s12, 4  ;;  %s3536_s8 = int_to_ptr.vmem [resolvable:$false] %s3535_s8 }
 0x5c9   : > { %2018 = vrot.lane.b32.xlu1 %v1817_v50, %s3608_s11 }
 0x5cb   : > { %2016 = vrot.lane.b32.xlu0 %v1814_v62, %s3608_s11 }
 0x5cf   : > { %2022 = vrot.lane.b32.xlu0 %v3161_v2, %s3608_s11  ;;  %s3537_s11 = scalar_lea.vmem %s3536_s8, 64 }
 0x601   : > { %v1850_v59 = vpop.permute.xlu0 %1849 }
 0x603   : > { %v1852_v15 = vpop.permute.xlu1 %1851 }
 0x605   : > { %v4232_v24 = vpop.permute.xlu0 %1996 }
 0x607   : > { %v4234_v60 = vpop.permute.xlu1 %1998 }
 0x609   : > { %v1846_v8 = vpop.permute.xlu0 %1845 }
 0x60a   : > { %1893 = vxpose.xlu1.b32.start [1/16] (narrow) %v1846_v8, 8 }
 0x60b   : > { %v1848_v54 = vpop.permute.xlu1 %1847 }
 0x60d   : > { %v1993_v21 = vpop.permute.xlu0 %1992 }
 0x60e   : > { %1894 = vxpose.xlu1.b32.cont [2/16] (narrow) %v1848_v54, 8 }
 0x60f   : > { %v1995_v44 = vpop.permute.xlu1 %1994 }
 0x611   : > { %v1858_v13 = vpop.permute.xlu0 %1857 }
 0x612   : > { %1895 = vxpose.xlu1.b32.cont [3/16] (narrow) %v1850_v59, 8 }
 0x613   : > { %v1860_v20 = vpop.permute.xlu1 %1859 }
 0x615   : > { %v2005_v29 = vpop.permute.xlu0 %2004 }
 0x616   : > { %1896 = vxpose.xlu1.b32.cont [4/16] (narrow) %v1852_v15, 8 }
 0x617   : > { %v2007_v48 = vpop.permute.xlu1 %2006 }
 0x619   : > { %v1854_v42 = vpop.permute.xlu0 %1853 }
 0x61a   : > { %1897 = vxpose.xlu1.b32.cont [5/16] (narrow) %v1854_v42, 8 }
 0x61b   : > { %v1856_v36 = vpop.permute.xlu1 %1855 }
 0x61d   : > { %v2001_v51 = vpop.permute.xlu0 %2000 }
 0x61e   : > { %1898 = vxpose.xlu1.b32.cont [6/16] (narrow) %v1856_v36, 8 }
 0x61f   : > { %v2003_v31 = vpop.permute.xlu1 %2002 }
 0x621   : > { %v1866_v58 = vpop.permute.xlu0 %1865 }
 0x622   : > { %1899 = vxpose.xlu1.b32.cont [7/16] (narrow) %v1858_v13, 8 }
 0x623   : > { %v1868_v10 = vpop.permute.xlu1 %1867 }
 0x625   : > { %v2013_v18 = vpop.permute.xlu0 %2012 }
 0x626   : > { %1900 = vxpose.xlu1.b32.cont [8/16] (narrow) %v1860_v20, 8 }
 0x627   : > { %v2015_v26 = vpop.permute.xlu1 %2014 }
 0x629   : > { %v1862_v32 = vpop.permute.xlu0 %1861 }
 0x62a   : > { %1901 = vxpose.xlu1.b32.cont [9/16] (narrow) %v1862_v32, 8 }
 0x62b   : > { %v1864_v33 = vpop.permute.xlu1 %1863 }
 0x62d   : > { %v2009_v37 = vpop.permute.xlu0 %2008 }
 0x62e   : > { %1902 = vxpose.xlu1.b32.cont [10/16] (narrow) %v1864_v33, 8 }
 0x62f   : > { %v2011_v6 = vpop.permute.xlu1 %2010 }
 0x631   : > { %v1874_v45 = vpop.permute.xlu0 %1873 }
 0x632   : > { %1903 = vxpose.xlu1.b32.cont [11/16] (narrow) %v1866_v58, 8 }
 0x633   : > { %v1876_v5 = vpop.permute.xlu1 %1875 }
 0x635   : > { %v2021_v43 = vpop.permute.xlu0 %2020 }
 0x636   : > { %1904 = vxpose.xlu1.b32.cont [12/16] (narrow) %v1868_v10, 8 }
 0x637   : > { %v1872_v49 = vpop.permute.xlu1 %1871 }
 0x639   : > { %v1870_v57 = vpop.permute.xlu0 %1869 }
 0x63a   : > { %1905 = vxpose.xlu1.b32.cont [13/16] (narrow) %v1870_v57, 8 }
 0x63b   : > { %v2019_v7 = vpop.permute.xlu1 %2018 }
 0x63d   : > { %v2017_v35 = vpop.permute.xlu0 %2016 }
 0x63e   : > { %1906 = vxpose.xlu1.b32.cont [14/16] (narrow) %v1872_v49, 8 }
 0x641   : > { %v2023_v23 = vpop.permute.xlu0 %2022 }
 0x642   : > { %1907 = vxpose.xlu1.b32.cont [15/16] (narrow) %v1874_v45, 8 }
 0x646   : > { %1908 = vxpose.xlu1.b32.end [16/16] (narrow) %v1876_v5, 8 }
 0x68a   : > { %v1909_v56 = vpop.trf.xlu1 }
 0x68b   : > { %v1928_v9 = vrot.slane %v1909_v56, %v3830_v14 }
 0x68d   : > { %1978 = vbcast.lane.b32.xlu1 %v1928_v9, 352  ;;  %1930 = vbcast.lane.b32.xlu0 %v1928_v9, 256 }
 0x691   : > { %1982 = vbcast.lane.b32.xlu1 %v1928_v9, 360  ;;  %1934 = vbcast.lane.b32.xlu0 %v1928_v9, 264 }
 0x695   : > { %1986 = vbcast.lane.b32.xlu1 %v1928_v9, 368  ;;  %1938 = vbcast.lane.b32.xlu0 %v1928_v9, 272 }
 0x699   : > { %1990 = vbcast.lane.b32.xlu1 %v1928_v9, 376  ;;  %1942 = vbcast.lane.b32.xlu0 %v1928_v9, 280 }
 0x69d   : > { %1946 = vbcast.lane.b32.xlu0 %v1928_v9, 288 }
 0x6a1   : > { %1950 = vbcast.lane.b32.xlu0 %v1928_v9, 296 }
 0x6a5   : > { %1954 = vbcast.lane.b32.xlu0 %v1928_v9, 304 }
 0x6a9   : > { %1958 = vbcast.lane.b32.xlu0 %v1928_v9, 312 }
 0x6ad   : > { %1962 = vbcast.lane.b32.xlu0 %v1928_v9, 320 }
 0x6b1   : > { %1966 = vbcast.lane.b32.xlu0 %v1928_v9, 328 }
 0x6b5   : > { %1970 = vbcast.lane.b32.xlu0 %v1928_v9, 336 }
 0x6b9   : > { %1974 = vbcast.lane.b32.xlu0 %v1928_v9, 344 }
 0x6d7   : > { %2040 = vxpose.xlu0.b32.start [1/16] (narrow) %v1993_v21, 8 }
 0x6db   : > { %2041 = vxpose.xlu0.b32.cont [2/16] (narrow) %v1995_v44, 8 }
 0x6df   : > { %2042 = vxpose.xlu0.b32.cont [3/16] (narrow) %v4232_v24, 8 }
 0x6e3   : > { %2043 = vxpose.xlu0.b32.cont [4/16] (narrow) %v4234_v60, 8 }
 0x6e7   : > { %2044 = vxpose.xlu0.b32.cont [5/16] (narrow) %v2001_v51, 8 }
 0x6eb   : > { %2045 = vxpose.xlu0.b32.cont [6/16] (narrow) %v2003_v31, 8 }
 0x6ef   : > { %2046 = vxpose.xlu0.b32.cont [7/16] (narrow) %v2005_v29, 8 }
 0x6f3   : > { %2047 = vxpose.xlu0.b32.cont [8/16] (narrow) %v2007_v48, 8 }
 0x6f7   : > { %2048 = vxpose.xlu0.b32.cont [9/16] (narrow) %v2009_v37, 8 }
 0x6fb   : > { %2049 = vxpose.xlu0.b32.cont [10/16] (narrow) %v2011_v6, 8 }
 0x6ff   : > { %2050 = vxpose.xlu0.b32.cont [11/16] (narrow) %v2013_v18, 8  ;;  %v1931_v28 = vpop.permute.xlu0 %1930  ;;  %v1979_v15 = vpop.permute.xlu1 %1978 }
 0x703   : > { %2051 = vxpose.xlu0.b32.cont [12/16] (narrow) %v2015_v26, 8  ;;  %v1935_v41 = vpop.permute.xlu0 %1934  ;;  %v1983_v36 = vpop.permute.xlu1 %1982 }
 0x707   : > { %2052 = vxpose.xlu0.b32.cont [13/16] (narrow) %v2017_v35, 8  ;;  %v1939_v1 = vpop.permute.xlu0 %1938  ;;  %v1987_v57 = vpop.permute.xlu1 %1986 }
 0x70b   : > { %2053 = vxpose.xlu0.b32.cont [14/16] (narrow) %v2019_v7, 8  ;;  %v1943_v52 = vpop.permute.xlu0 %1942 }
 0x70f   : > { %2054 = vxpose.xlu0.b32.cont [15/16] (narrow) %v2021_v43, 8  ;;  %v1947_v55 = vpop.permute.xlu0 %1946 }
 0x713   : > { %2055 = vxpose.xlu0.b32.end [16/16] (narrow) %v2023_v23, 8  ;;  %v1951_v3 = vpop.permute.xlu0 %1950 }
 0x717   : > { %v1955_v40 = vpop.permute.xlu0 %1954 }
 0x71b   : > { %v1959_v62 = vpop.permute.xlu0 %1958 }
 0x71f   : > { %v1963_v2 = vpop.permute.xlu0 %1962 }
 0x723   : > { %v1967_v11 = vpop.permute.xlu0 %1966 }
 0x727   : > { %v1971_v50 = vpop.permute.xlu0 %1970 }
 0x72b   : > { %v1975_v12 = vpop.permute.xlu0 %1974 }
 0x757   : > { %v2056_v59 = vpop.trf.xlu0 }
 0x758   : > { %v4240_v24 = vrot.slane %v2056_v59, %v3830_v14 }
 0x75a   : > { %v2077_v60 = vadd.f32 %v4240_v24, %v1935_v41  ;;  %v2076_v8 = vadd.f32 %v4240_v24, %v1931_v28  ;;  %v2078_v54 = vadd.f32 %v4240_v24, %v1939_v1  ;;  %v2081_v21 = vadd.f32 %v4240_v24, %v1951_v3  ;;  %v1991_v1 = vpop.permute.xlu1 %1990 }
 0x75b   : > { %v2079_v44 = vadd.f32 %v4240_v24, %v1943_v52  ;;  %v2083_v13 = vadd.f32 %v4240_v24, %v1959_v62  ;;  %v2080_v10 = vadd.f32 %v4240_v24, %v1947_v55  ;;  %v2085_v18 = vadd.f32 %v4240_v24, %v1967_v11 }
 0x75c   : > { %v2093_v20 = vmul.f32 0.2, %v2077_v60  ;;  %v2092_v29 = vmul.f32 0.2, %v2076_v8  ;;  %v2094_v48 = vmul.f32 0.2, %v2078_v54  ;;  %v2087_v7 = vadd.f32 %v4240_v24, %v1975_v12 }
 0x75d   : > { %v2097_v42 = vmul.f32 0.2, %v2081_v21  ;;  %v2095_v31 = vmul.f32 0.2, %v2079_v44  ;;  %v2099_v58 = vmul.f32 0.2, %v2083_v13  ;;  %v2089_v41 = vadd.f32 %v4240_v24, %v1983_v36 }
 0x75e   : > { %v2109_v51 = vmax.f32 %v2077_v60, %v2093_v20  ;;  %v2108_v14 = vmax.f32 %v2076_v8, %v2092_v29  ;;  %v2110_v33 = vmax.f32 %v2078_v54, %v2094_v48  ;;  %v2096_v43 = vmul.f32 0.2, %v2080_v10 }
 0x75f   : > { %v2113_v37 = vmax.f32 %v2081_v21, %v2097_v42  ;;  %v2111_v6 = vmax.f32 %v2079_v44, %v2095_v31  ;;  %v2115_v45 = vmax.f32 %v2083_v13, %v2099_v58  ;;  %v2101_v5 = vmul.f32 0.2, %v2085_v18 }
 0x760   : > { %v4251_v26 = vadd.f32 %v3859_v38, %v2109_v51  ;;  %v4254_v32 = vadd.f32 %v3853_v30, %v2108_v14  ;;  %v4259_v49 = vadd.f32 %v3867_v46, %v2110_v33  ;;  %v2082_v30 = vadd.f32 %v4240_v24, %v1955_v40 }
 0x761   : > { %v4262_v38 = vadd.f32 %v3890_v4, %v2113_v37  ;;  %v4269_v56 = vadd.f32 %v3874_v53, %v2111_v6  ;;  %v4272_v9 = vadd.f32 %v3911_v34, %v2115_v45  ;;  %v2112_v35 = vmax.f32 %v2080_v10, %v2096_v43 }
 0x762   : > { %2142 = vmax.xlane.f32.xlu1 %v4251_v26  ;;  %2140 = vmax.xlane.f32.xlu0 %v4254_v32  ;;  %v2117_v46 = vmax.f32 %v2085_v18, %v2101_v5  ;;  %v2098_v23 = vmul.f32 0.2, %v2082_v30  ;;  %v2103_v28 = vmul.f32 0.2, %v2087_v7  ;;  %v2084_v4 = vadd.f32 %v4240_v24, %v1963_v2 }
 0x763   : > { %v4279_v52 = vadd.f32 %v3882_v61, %v2112_v35  ;;  %v2086_v34 = vadd.f32 %v4240_v24, %v1971_v50  ;;  %v2091_v55 = vadd.f32 %v4240_v24, %v1991_v1  ;;  %v2105_v2 = vmul.f32 0.2, %v2089_v41 }
 0x764   : > { %v4282_v53 = vadd.f32 %v3905_v27, %v2117_v46  ;;  %v2114_v3 = vmax.f32 %v2082_v30, %v2098_v23  ;;  %v2119_v40 = vmax.f32 %v2087_v7, %v2103_v28  ;;  %v2100_v62 = vmul.f32 0.2, %v2084_v4 }
 0x765   : > { %v2102_v11 = vmul.f32 0.2, %v2086_v34  ;;  %v2107_v12 = vmul.f32 0.2, %v2091_v55  ;;  %v2088_v61 = vadd.f32 %v4240_v24, %v1979_v15  ;;  %v2121_v60 = vmax.f32 %v2089_v41, %v2105_v2 }
 0x766   : > { %2144 = vmax.xlane.f32.xlu1 %v4259_v49  ;;  %2150 = vmax.xlane.f32.xlu0 %v4262_v38  ;;  %v4290_v59 = vadd.f32 %v3899_v16, %v2114_v3  ;;  %v4293_v27 = vadd.f32 %v3936_v63, %v2119_v40  ;;  %v2116_v50 = vmax.f32 %v2084_v4, %v2100_v62 }
 0x767   : > { %v2104_v8 = vmul.f32 0.2, %v2088_v61  ;;  %v2090_v54 = vadd.f32 %v4240_v24, %v1987_v57  ;;  %v4302_v15 = vadd.f32 %v3959_v22, %v2121_v60  ;;  %v2118_v16 = vmax.f32 %v2086_v34, %v2102_v11 }
 0x768   : > { %v4299_v21 = vadd.f32 %v3915_v39, %v2116_v50  ;;  %v2123_v44 = vmax.f32 %v2091_v55, %v2107_v12 }
 0x769   : > { %v4307_v63 = vadd.f32 %v3921_v47, %v2118_v16  ;;  %v2120_v20 = vmax.f32 %v2088_v61, %v2104_v8  ;;  %v2106_v24 = vmul.f32 0.2, %v2090_v54 }
 0x76a   : > { %2146 = vmax.xlane.f32.xlu1 %v4269_v56  ;;  %2154 = vmax.xlane.f32.xlu0 %v4272_v9  ;;  %v4310_v13 = vadd.f32 %v3966_v25, %v2123_v44 }
 0x76b   : > { %v4315_v39 = vadd.f32 %v3938_v0, %v2120_v20  ;;  %v2122_v22 = vmax.f32 %v2090_v54, %v2106_v24 }
 0x76d   : > { %v4319_v29 = vadd.f32 %v3956_v17, %v2122_v22 }
 0x76e   : > { %2148 = vmax.xlane.f32.xlu1 %v4279_v52  ;;  %2158 = vmax.xlane.f32.xlu0 %v4282_v53 }
 0x772   : > { %2152 = vmax.xlane.f32.xlu1 %v4290_v59  ;;  %2162 = vmax.xlane.f32.xlu0 %v4293_v27 }
 0x776   : > { %2156 = vmax.xlane.f32.xlu1 %v4299_v21  ;;  %2166 = vmax.xlane.f32.xlu0 %v4302_v15 }
 0x77a   : > { %2160 = vmax.xlane.f32.xlu1 %v4307_v63  ;;  %2170 = vmax.xlane.f32.xlu0 %v4310_v13 }
 0x77e   : > { %2164 = vmax.xlane.f32.xlu1 %v4315_v39 }
 0x782   : > { %2168 = vmax.xlane.f32.xlu1 %v4319_v29 }
 0x7ef   : > { %v2143_v47 = vpop.xlane.xlu1 %2142  ;;  %v2141_v25 = vpop.xlane.xlu0 %2140 }
 0x7f0   : > { %v2173_v48 = vsub.f32 %v4251_v26, %v2143_v47  ;;  %v2172_v42 = vsub.f32 %v4254_v32, %v2141_v25 }
 0x7f2   : > { %v2190_v36 = vmul.f32 1.442695, %v2173_v48  ;;  %v2188_v51 = vmul.f32 1.442695, %v2172_v42 }
 0x7f3   : > { %v2145_v14 = vpop.xlane.xlu1 %2144  ;;  %v2151_v31 = vpop.xlane.xlu0 %2150 }
 0x7f4   : > { %3437 = vpow2.f32 %v2190_v36  ;;  %v2174_v0 = vsub.f32 %v4259_v49, %v2145_v14  ;;  %v2177_v17 = vsub.f32 %v4262_v38, %v2151_v31 }
 0x7f5   : > { %3439 = vpow2.f32 %v2188_v51 }
 0x7f6   : > { %v2192_v58 = vmul.f32 1.442695, %v2174_v0  ;;  %v2198_v26 = vmul.f32 1.442695, %v2177_v17  ;;  %v3263_v17 = vld [vmem:[%s3759_s15 + $0x4] ss:$16 sps:$4 sm:$0xff]  }
 0x7f7   : > { %v2147_v10 = vpop.xlane.xlu1 %2146  ;;  %v2155_v18 = vpop.xlane.xlu0 %2154  ;;  %2644 = vmatprep.subr.bf16.mxu1 %v3263_v17 }
 0x7f8   : > { %3441 = vpow2.f32 %v2192_v58  ;;  %v2175_v33 = vsub.f32 %v4269_v56, %v2147_v10  ;;  %v2179_v32 = vsub.f32 %v4272_v9, %v2155_v18  ;;  %v3261_v58 = vld [vmem:[%s3759_s15] ss:$16 sps:$4 sm:$0xff]   ;;  %v3264_v10 = vld [vmem:[%s3759_s15 + $0x8] ss:$16 sps:$4 sm:$0xff]   ;;  %v3266_v18 = vld [vmem:[%s3759_s15 + $0xc] ss:$16 sps:$4 sm:$0xff]  }
 0x7f9   : > { %2685 = vmatprep.subr.bf16.mxu0 %v3266_v18  ;;  %2645 = vmatpush1.bf16.msra.mxu1 %v3261_v58 }
 0x7fa   : > { %v2194_v37 = vmul.f32 1.442695, %v2175_v33  ;;  %v2202_v30 = vmul.f32 1.442695, %v2179_v32  ;;  %v3269_v33 = vld [vmem:[%s3759_s15 + $0x24] ss:$16 sps:$4 sm:$0xff]  }
 0x7fb   : > { %v2149_v6 = vpop.xlane.xlu1 %2148  ;;  %v2159_v45 = vpop.xlane.xlu0 %2158  ;;  %2646 = vmatprep.subr.bf16.mxu1 %v3269_v33  ;;  %v3270_v32 = vld [vmem:[%s3759_s15 + $0x28] ss:$16 sps:$4 sm:$0xff]  }
 0x7fc   : > { %3443 = vpow2.f32 %v2194_v37  ;;  %v2176_v43 = vsub.f32 %v4279_v52, %v2149_v6  ;;  %v2181_v38 = vsub.f32 %v4282_v53, %v2159_v45  ;;  %v3272_v37 = vld [vmem:[%s3759_s15 + $0x2c] ss:$16 sps:$4 sm:$0xff]   ;;  %v3275_v6 = vld [vmem:[%s3759_s15 + $0x44] ss:$16 sps:$4 sm:$0xff]  }
 0x7fd   : > { %3445 = vpow2.f32 %v2198_v26  ;;  %v3267_v26 = vld [vmem:[%s3759_s15 + $0x20] ss:$16 sps:$4 sm:$0xff]   ;;  %v3278_v45 = vld [vmem:[%s3759_s15 + $0x4c] ss:$16 sps:$4 sm:$0xff]  }
 0x7fe   : > { %v3438_v5 = vpop.eup %3437  ;;  %v2196_v57 = vmul.f32 1.442695, %v2176_v43  ;;  %v2206_v28 = vmul.f32 1.442695, %v2181_v38  ;;  %2647 = vmatpush1.bf16.msra.mxu1 %v3267_v26  ;;  %v3273_v43 = vld [vmem:[%s3759_s15 + $0x40] ss:$16 sps:$4 sm:$0xff]  }
 0x7ff   : > { %v3440_v49 = vpop.eup %3439  ;;  %v2153_v7 = vpop.xlane.xlu1 %2152  ;;  %2222 = vadd.xlane.f32.xlu0 %v3438_v5  ;;  %2648 = vmatprep.subr.bf16.mxu1 %v3275_v6  ;;  %v3282_v38 = vld [vmem:[%s3759_s15 + $0x68] ss:$16 sps:$4 sm:$0xff]  }
 0x800   : > { %v2163_v35 = vpop.xlane.xlu0 %2162  ;;  %3447 = vpow2.f32 %v2196_v57  ;;  %v2178_v56 = vsub.f32 %v4290_v59, %v2153_v7  ;;  %2220 = vadd.xlane.f32.xlu1 %v3440_v49  ;;  %v2252_v9 = vpack.c.bf16 %v3438_v5, %v3440_v49  ;;  %v3276_v5 = vld [vmem:[%s3759_s15 + $0x48] ss:$16 sps:$4 sm:$0xff]   ;;  %v3281_v57 = vld [vmem:[%s3759_s15 + $0x64] ss:$16 sps:$4 sm:$0xff]   ;;  %v3284_v49 = vld [vmem:[%s3759_s15 + $0x6c] ss:$16 sps:$4 sm:$0xff]  }
 0x801   : > { %3449 = vpow2.f32 %v2202_v30  ;;  %v2183_v4 = vsub.f32 %v4293_v27, %v2163_v35  ;;  %v3279_v30 = vld [vmem:[%s3759_s15 + $0x60] ss:$16 sps:$4 sm:$0xff]   ;;  %v3287_v7 = vld [vmem:[%s3759_s15 + $0x84] ss:$16 sps:$4 sm:$0xff]   ;;  %v3290_v35 = vld [vmem:[%s3759_s15 + $0x8c] ss:$16 sps:$4 sm:$0xff]  }
 0x802   : > { %v3442_v46 = vpop.eup %3441  ;;  %v2200_v23 = vmul.f32 1.442695, %v2178_v56  ;;  %3178 = vmatprep.mubr.bf16.mxu0 %v2252_v9  ;;  %2649 = vmatpush1.bf16.msra.mxu1 %v3273_v43  ;;  %v3285_v56 = vld [vmem:[%s3759_s15 + $0x80] ss:$16 sps:$4 sm:$0xff]   ;;  %v3288_v9 = vld [vmem:[%s3759_s15 + $0x88] ss:$16 sps:$4 sm:$0xff]  }
 0x803   : > { %v2157_v41 = vpop.xlane.xlu1 %2156  ;;  %v2210_v55 = vmul.f32 1.442695, %v2183_v4  ;;  %2650 = vmatprep.subr.bf16.mxu1 %v3281_v57  ;;  %v3294_v4 = vld [vmem:[%s3759_s15 + $0xa8] ss:$16 sps:$4 sm:$0xff]  }
 0x804   : > { %v2167_v1 = vpop.xlane.xlu0 %2166  ;;  %3451 = vpow2.f32 %v2200_v23  ;;  %v2180_v52 = vsub.f32 %v4299_v21, %v2157_v41  ;;  %2224 = vadd.xlane.f32.xlu1 %v3442_v46  ;;  %v3296_v23 = vld [vmem:[%s3759_s15 + $0xac] ss:$16 sps:$4 sm:$0xff]   ;;  %v3299_v41 = vld [vmem:[%s3759_s15 + $0xc4] ss:$16 sps:$4 sm:$0xff]  }
 0x805   : > { %3453 = vpow2.f32 %v2206_v28  ;;  %v2185_v3 = vsub.f32 %v4302_v15, %v2167_v1  ;;  %v3291_v28 = vld [vmem:[%s3759_s15 + $0xa0] ss:$16 sps:$4 sm:$0xff]   ;;  %v3302_v1 = vld [vmem:[%s3759_s15 + $0xcc] ss:$16 sps:$4 sm:$0xff]  }
 0x806   : > { %v3444_v53 = vpop.eup %3443  ;;  %v2204_v34 = vmul.f32 1.442695, %v2180_v52  ;;  %2651 = vmatpush1.bf16.msra.mxu1 %v3279_v30  ;;  %v3297_v52 = vld [vmem:[%s3759_s15 + $0xc0] ss:$16 sps:$4 sm:$0xff]  }
 0x807   : > { %v2161_v40 = vpop.xlane.xlu1 %2160  ;;  %2226 = vadd.xlane.f32.xlu0 %v3444_v53  ;;  %v2253_v62 = vpack.c.bf16 %v3444_v53, %v3442_v46  ;;  %v3446_v12 = vpop.eup %3445  ;;  %v2214_v27 = vmul.f32 1.442695, %v2185_v3  ;;  %2652 = vmatprep.subr.bf16.mxu1 %v3287_v7  ;;  %v3293_v46 = vld [vmem:[%s3759_s15 + $0xa4] ss:$16 sps:$4 sm:$0xff]   ;;  %v3300_v53 = vld [vmem:[%s3759_s15 + $0xc8] ss:$16 sps:$4 sm:$0xff]  }
 0x808   : > { %3455 = vpow2.f32 %v2204_v34  ;;  %v2182_v2 = vsub.f32 %v4307_v63, %v2161_v40  ;;  %v2171_v11 = vpop.xlane.xlu0 %2170  ;;  %v3305_v34 = vld [vmem:[%s3759_s15 + $0xe4] ss:$16 sps:$4 sm:$0xff]   ;;  %v3303_v3 = vld [vmem:[%s3759_s15 + $0xe0] ss:$16 sps:$4 sm:$0xff]   ;;  %v3306_v40 = vld [vmem:[%s3759_s15 + $0xe8] ss:$16 sps:$4 sm:$0xff]  }
 0x809   : > { %3179 = vmatmul.mubr.bf16.vlgmr.msra.gmra.mrb[32].mxu0 %v2253_v62  ;;  %3457 = vpow2.f32 %v2210_v55  ;;  %v2187_v50 = vsub.f32 %v4310_v13, %v2171_v11  ;;  %v3308_v55 = vld [vmem:[%s3759_s15 + $0xec] ss:$16 sps:$4 sm:$0xff]   ;;  %s2880_s15 = sshll.u32 %s3755_s16, 1 }
 0x80a   : > { %v3448_v61 = vpop.eup %3447  ;;  %v2208_v59 = vmul.f32 1.442695, %v2182_v2  ;;  %2686 = vmatpush1.bf16.msra.mxu0 %v3264_v10  ;;  %2653 = vmatpush1.bf16.msra.mxu1 %v3285_v56  ;;  %s326_s20 = scalar_lea.vmem [#allocation5], %s2880_s15 }
 0x80b   : > { %v2165_v60 = vpop.xlane.xlu1 %2164  ;;  %2228 = vadd.xlane.f32.xlu1 %v3448_v61  ;;  %2230 = vadd.xlane.f32.xlu0 %v3446_v12  ;;  %v2254_v8 = vpack.c.bf16 %v3446_v12, %v3448_v61  ;;  %v3450_v21 = vpop.eup %3449  ;;  %v2218_v44 = vmul.f32 1.442695, %v2187_v50  ;;  %s2778_s22 = sshll.u32 %s326_s20, 4  ;;  %s4401_s22 = int_to_ptr.vmem [resolvable:$true] %s2778_s22 }
 0x80c   : > { %3459 = vpow2.f32 %v2208_v59  ;;  %v2184_v54 = vsub.f32 %v4315_v39, %v2165_v60  ;;  %2687 = vmatprep.subr.bf16.mxu0 %v3272_v37  ;;  %2654 = vmatprep.subr.bf16.mxu1 %v3293_v46  ;;  %s3531_s9 = scalar_lea.vmem %s4401_s22, 32  ;;  %p3538_p10 = scmp.lt.s32.totalorder %s4401_s22, %s3536_s8 }
 0x80d   : > { %3182 = vmatprep.mubr.bf16.mxu0 %v2254_v8  ;;  %3461 = vpow2.f32 %v2214_v27  ;;  %v4373_v27 = vld [vmem:[%s4449_s6] ss:$0 sm:$0xff]  ;;  %p3532_p6 = scmp.ne.s32.totalorder %s4401_s22, %s3531_s9  ;;  %p3539_p0 = scmp.lt.s32.totalorder %s3537_s11, %s3531_s9 }
 0x80e   : > { %v3452_v15 = vpop.eup %3451  ;;  %v2212_v16 = vmul.f32 1.442695, %v2184_v54  ;;  %2688 = vmatpush1.bf16.msra.mxu0 %v3270_v32  ;;  %2655 = vmatpush1.bf16.msra.mxu1 %v3291_v28 }
 0x80f   : > { %v2169_v63 = vpop.xlane.xlu1 %2168  ;;  %2232 = vadd.xlane.f32.xlu1 %v3452_v15  ;;  %2234 = vadd.xlane.f32.xlu0 %v3450_v21  ;;  %v2255_v20 = vpack.c.bf16 %v3450_v21, %v3452_v15  ;;  %v3454_v24 = vpop.eup %3453  ;;  %p3533_p13 = pnand %p3532_p6, %p4459_p12  ;;  %p3540_p2 = por %p3539_p0, %p3538_p10 }
 0x810   : > { %3463 = vpow2.f32 %v2212_v16  ;;  %v2186_v13 = vsub.f32 %v4319_v29, %v2169_v63  ;;  %2689 = vmatprep.subr.bf16.mxu0 %v3278_v45  ;;  %2656 = vmatprep.subr.bf16.mxu1 %v3299_v41 }
 0x811   : > { %3183 = vmatmul.mubr.bf16.gmra.mrb[36].mxu0 %v2255_v20  ;;  %3465 = vpow2.f32 %v2218_v44  ;;  %p3534_p8 = pneg %p3533_p13 }
 0x812   : > { %v3456_v22 = vpop.eup %3455  ;;  %v2216_v47 = vmul.f32 1.442695, %v2186_v13  ;;  %2690 = vmatpush1.bf16.msra.mxu0 %v3276_v5  ;;  %2657 = vmatpush1.bf16.msra.mxu1 %v3297_v52 }
 0x813   : > { %2236 = vadd.xlane.f32.xlu1 %v3456_v22  ;;  %2238 = vadd.xlane.f32.xlu0 %v3454_v24  ;;  %v2256_v39 = vpack.c.bf16 %v3454_v24, %v3456_v22  ;;  %v3458_v25 = vpop.eup %3457  ;;  %p3541_p4 = pnand %p3540_p2, %p3534_p8 }
 0x814   : > { %3467 = vpow2.f32 %v2216_v47  ;;  %2691 = vmatprep.subr.bf16.mxu0 %v3284_v49  ;;  %2658 = vmatprep.subr.bf16.mxu1 %v3305_v34  ;;  %v3609_v47 = vmov 0  }
 0x815   : > { %3186 = vmatprep.mubr.bf16.mxu0 %v2256_v39  ;;  %2676 = vmatprep.mubr.bf16.mxu1 %v3609_v47 }
 0x816   : > { %v3460_v48 = vpop.eup %3459  ;;  %2692 = vmatpush1.bf16.msra.mxu0 %v3282_v38  ;;  %2659 = vmatpush1.bf16.msra.mxu1 %v3303_v3 }
 0x817   : > { %2240 = vadd.xlane.f32.xlu1 %v3460_v48  ;;  %2242 = vadd.xlane.f32.xlu0 %v3458_v25  ;;  %v2257_v42 = vpack.c.bf16 %v3458_v25, %v3460_v48  ;;  %v3462_v36 = vpop.eup %3461 }
 0x818   : > { %2693 = vmatprep.subr.bf16.mxu0 %v3290_v35 }
 0x819   : > { %3187 = vmatmul.mubr.bf16.gmra.mrb[40].mxu0 %v2257_v42 }
 0x81a   : > { %v3464_v29 = vpop.eup %3463  ;;  %2694 = vmatpush1.bf16.msra.mxu0 %v3288_v9 }
 0x81b   : > { %2244 = vadd.xlane.f32.xlu1 %v3464_v29  ;;  %2246 = vadd.xlane.f32.xlu0 %v3462_v36  ;;  %v2258_v51 = vpack.c.bf16 %v3462_v36, %v3464_v29  ;;  %v3466_v14 = vpop.eup %3465 }
 0x81c   : > { %2695 = vmatprep.subr.bf16.mxu0 %v3296_v23 }
 0x81d   : > { %3190 = vmatprep.mubr.bf16.mxu0 %v2258_v51 }
 0x81e   : > { %v3468_v31 = vpop.eup %3467  ;;  %2696 = vmatpush1.bf16.msra.mxu0 %v3294_v4 }
 0x81f   : > { %2248 = vadd.xlane.f32.xlu1 %v3468_v31  ;;  %2250 = vadd.xlane.f32.xlu0 %v3466_v14  ;;  %v2259_v0 = vpack.c.bf16 %v3466_v14, %v3468_v31 }
 0x820   : > { %2697 = vmatprep.subr.bf16.mxu0 %v3302_v1 }
 0x821   : > { %3191 = vmatmul.mubr.bf16.gmra.mrb[44].mxu0 %v2259_v0 }
 0x822   : > { %2698 = vmatpush1.bf16.msra.mxu0 %v3300_v53  ;;  %2717 = vmatprep.mubr.bf16.mxu0 %v3609_v47 }
 0x823   : > { %2699 = vmatprep.subr.bf16.mxu0 %v3308_v55 }
 0x826   : > { %2700 = vmatpush1.bf16.msra.mxu0 %v3306_v40 }
 0x88c   : > { %v2223_v2 = vpop.xlane.xlu0 %2222 }
 0x88d   : > { %v2221_v62 = vpop.xlane.xlu1 %2220 }
 0x88e   : > { %3469 = vrcp.f32 %v2221_v62 }
 0x88f   : > { %3471 = vrcp.f32 %v2223_v2 }
 0x891   : > { %v2225_v11 = vpop.xlane.xlu1 %2224 }
 0x892   : > { %3473 = vrcp.f32 %v2225_v11 }
 0x894   : > { %v2227_v12 = vpop.xlane.xlu0 %2226 }
 0x895   : > { %3475 = vrcp.f32 %v2227_v12 }
 0x898   : > { %v3470_v59 = vpop.eup %3469  ;;  %v2229_v60 = vpop.xlane.xlu1 %2228 }
 0x899   : > { %v3472_v21 = vpop.eup %3471  ;;  %3477 = vrcp.f32 %v2229_v60  ;;  %v2231_v63 = vpop.xlane.xlu0 %2230 }
 0x89a   : > { %3479 = vrcp.f32 %v2231_v63 }
 0x89c   : > { %v3474_v20 = vpop.eup %3473  ;;  %v2233_v25 = vpop.xlane.xlu1 %2232 }
 0x89d   : > { %3481 = vrcp.f32 %v2233_v25  ;;  %v2235_v14 = vpop.xlane.xlu0 %2234 }
 0x89e   : > { %3483 = vrcp.f32 %v2235_v14 }
 0x89f   : > { %v3476_v42 = vpop.eup %3475 }
 0x8a0   : > { %v2237_v18 = vpop.xlane.xlu1 %2236 }
 0x8a1   : > { %3485 = vrcp.f32 %v2237_v18  ;;  %v2239_v45 = vpop.xlane.xlu0 %2238 }
 0x8a2   : > { %3487 = vrcp.f32 %v2239_v45 }
 0x8a3   : > { %v3478_v31 = vpop.eup %3477 }
 0x8a4   : > { %v3480_v37 = vpop.eup %3479  ;;  %v2241_v38 = vpop.xlane.xlu1 %2240 }
 0x8a5   : > { %3489 = vrcp.f32 %v2241_v38  ;;  %v2243_v23 = vpop.xlane.xlu0 %2242 }
 0x8a6   : > { %3491 = vrcp.f32 %v2243_v23 }
 0x8a7   : > { %v3482_v43 = vpop.eup %3481 }
 0x8a8   : > { %v3484_v35 = vpop.eup %3483  ;;  %v2245_v1 = vpop.xlane.xlu1 %2244 }
 0x8a9   : > { %3493 = vrcp.f32 %v2245_v1  ;;  %v2247_v55 = vpop.xlane.xlu0 %2246 }
 0x8aa   : > { %3495 = vrcp.f32 %v2247_v55 }
 0x8ab   : > { %v3486_v28 = vpop.eup %3485 }
 0x8ac   : > { %v3488_v52 = vpop.eup %3487  ;;  %v2249_v2 = vpop.xlane.xlu1 %2248 }
 0x8ad   : > { %3497 = vrcp.f32 %v2249_v2 }
 0x8af   : > { %v3490_v3 = vpop.eup %3489 }
 0x8b0   : > { %v3492_v11 = vpop.eup %3491 }
 0x8dc   : > { %v3180_v61 = vpop.f32.mrb[32].mxu0 }
 0x8dd   : > { %v2302_v50 = vpop.f32.mrb[33].mxu0  ;;  %v2370_v13 = vmul.f32 %v3474_v20, %v3180_v61 }
 0x8de   : > { %v2366_v8 = vmul.f32 %v3470_v59, %v2302_v50  ;;  %v3181_v54 = vpop.f32.mrb[34].mxu0  ;;  %v2251_v59 = vpop.xlane.xlu0 %2250 }
 0x8df   : > { %v2305_v15 = vpop.f32.mrb[35].mxu0  ;;  %v2405_v29 = vadd.f32 %v4373_v27, %v2370_v13  ;;  %v2372_v51 = vmul.f32 %v3476_v42, %v3181_v54  ;;  %v3494_v50 = vpop.eup %3493  ;;  %3499 = vrcp.f32 %v2251_v59 }
 0x8e0   : > { %v2403_v16 = vadd.f32 %v4373_v27, %v2366_v8  ;;  %v2368_v44 = vmul.f32 %v3472_v21, %v2305_v15  ;;  %v3496_v54 = vpop.eup %3495 }
 0x8e1   : > { %v2406_v0 = vadd.f32 %v4373_v27, %v2372_v51 }
 0x8e2   : > { %2451 = vxpose.xlu1.b32.start [1/16] (narrow) %v2403_v16, 8  ;;  %v2404_v24 = vadd.f32 %v4373_v27, %v2368_v44  ;;  %v3498_v16 = vpop.eup %3497 }
 0x8e4   : > { %v3184_v22 = vpop.f32.mrb[36].mxu0 }
 0x8e5   : > { %v2318_v39 = vpop.f32.mrb[37].mxu0  ;;  %v2378_v5 = vmul.f32 %v3482_v43, %v3184_v22 }
 0x8e6   : > { %2452 = vxpose.xlu1.b32.cont [2/16] (narrow) %v2404_v24, 8  ;;  %v3185_v48 = vpop.f32.mrb[38].mxu0  ;;  %v2374_v58 = vmul.f32 %v3478_v31, %v2318_v39 }
 0x8e7   : > { %v2321_v36 = vpop.f32.mrb[39].mxu0  ;;  %v2409_v9 = vadd.f32 %v4373_v27, %v2378_v5  ;;  %v2380_v46 = vmul.f32 %v3484_v35, %v3185_v48 }
 0x8e8   : > { %v2407_v32 = vadd.f32 %v4373_v27, %v2374_v58  ;;  %v2376_v6 = vmul.f32 %v3480_v37, %v2321_v36 }
 0x8e9   : > { %v2410_v4 = vadd.f32 %v4373_v27, %v2380_v46  ;;  %v3500_v20 = vpop.eup %3499 }
 0x8ea   : > { %2453 = vxpose.xlu1.b32.cont [3/16] (narrow) %v2405_v29, 8  ;;  %v2408_v57 = vadd.f32 %v4373_v27, %v2376_v6 }
 0x8ec   : > { %v3188_v17 = vpop.f32.mrb[40].mxu0 }
 0x8ed   : > { %v2334_v10 = vpop.f32.mrb[41].mxu0  ;;  %v2386_v40 = vmul.f32 %v3490_v3, %v3188_v17 }
 0x8ee   : > { %2454 = vxpose.xlu1.b32.cont [4/16] (narrow) %v2406_v0, 8  ;;  %v3189_v33 = vpop.f32.mrb[42].mxu0  ;;  %v2382_v41 = vmul.f32 %v3486_v28, %v2334_v10 }
 0x8ef   : > { %v2337_v26 = vpop.f32.mrb[43].mxu0  ;;  %v2413_v12 = vadd.f32 %v4373_v27, %v2386_v40  ;;  %v2388_v61 = vmul.f32 %v3492_v11, %v3189_v33 }
 0x8f0   : > { %v2411_v53 = vadd.f32 %v4373_v27, %v2382_v41  ;;  %v2384_v34 = vmul.f32 %v3488_v52, %v2337_v26 }
 0x8f1   : > { %v2414_v60 = vadd.f32 %v4373_v27, %v2388_v61 }
 0x8f2   : > { %2455 = vxpose.xlu1.b32.cont [5/16] (narrow) %v2407_v32, 8  ;;  %v2412_v62 = vadd.f32 %v4373_v27, %v2384_v34 }
 0x8f4   : > { %v3192_v49 = vpop.f32.mrb[44].mxu0 }
 0x8f5   : > { %v2350_v30 = vpop.f32.mrb[45].mxu0  ;;  %v2394_v44 = vmul.f32 %v3498_v16, %v3192_v49 }
 0x8f6   : > { %2456 = vxpose.xlu1.b32.cont [6/16] (narrow) %v2408_v57, 8  ;;  %v3193_v7 = vpop.f32.mrb[46].mxu0  ;;  %v2390_v8 = vmul.f32 %v3494_v50, %v2350_v30  ;;  %v4458_v30 = vlaneseq }
 0x8f7   : > { %v2353_v56 = vpop.f32.mrb[47].mxu0  ;;  %v2417_v13 = vadd.f32 %v4373_v27, %v2394_v44  ;;  %v2396_v24 = vmul.f32 %v3500_v20, %v3193_v7 }
 0x8f8   : > { %v2415_v21 = vadd.f32 %v4373_v27, %v2390_v8  ;;  %v2392_v15 = vmul.f32 %v3496_v54, %v2353_v56  ;;  %vm2760_vm4 = vcmp.lt.s32.totalorder %v4458_v30, 256 }
 0x8f9   : > { %v2418_v22 = vadd.f32 %v4373_v27, %v2396_v24 }
 0x8fa   : > { %2457 = vxpose.xlu1.b32.cont [7/16] (narrow) %v2409_v9, 8  ;;  %v2416_v63 = vadd.f32 %v4373_v27, %v2392_v15 }
 0x8fe   : > { %2458 = vxpose.xlu1.b32.cont [8/16] (narrow) %v2410_v4, 8 }
 0x902   : > { %2459 = vxpose.xlu1.b32.cont [9/16] (narrow) %v2411_v53, 8 }
 0x906   : > { %2460 = vxpose.xlu1.b32.cont [10/16] (narrow) %v2412_v62, 8 }
 0x90a   : > { %2461 = vxpose.xlu1.b32.cont [11/16] (narrow) %v2413_v12, 8 }
 0x90e   : > { %2462 = vxpose.xlu1.b32.cont [12/16] (narrow) %v2414_v60, 8 }
 0x912   : > { %2463 = vxpose.xlu1.b32.cont [13/16] (narrow) %v2415_v21, 8 }
 0x916   : > { %2464 = vxpose.xlu1.b32.cont [14/16] (narrow) %v2416_v63, 8 }
 0x91a   : > { %2465 = vxpose.xlu1.b32.cont [15/16] (narrow) %v2417_v13, 8 }
 0x91e   : > { %2466 = vxpose.xlu1.b32.end [16/16] (narrow) %v2418_v22, 8 }
 0x962   : > { %v2467_v47 = vpop.trf.xlu1 }
 0x963   : > { %v2483_v39 = vpack.c.bf16 %v2467_v47, %v2467_v47 }
 0x965   : > { %2677 = vmatmul.mubr.bf16.vlgmr.msra.gmra.mrb[32].mxu1 %v2483_v39  ;;  %2718 = vmatmul.mubr.bf16.vlgmr.msra.gmra.mrb[48].mxu0 %v2483_v39 }
 0xa38   : > { %v2678_v25 = vpop.f32.mrb[32].mxu1  ;;  %v2719_v48 = vpop.f32.mrb[48].mxu0 }
 0xa39   : > { %v2726_v42 = vmul.f32 %v2719_v48, %v2678_v25  ;;  %v2680_v36 = vpop.f32.mrb[33].mxu1  ;;  %v2721_v29 = vpop.f32.mrb[49].mxu0 }
 0xa3a   : > { %v2727_v51 = vmul.f32 %v2721_v29, %v2680_v36  ;;  %v2682_v14 = vpop.f32.mrb[34].mxu1  ;;  %v2723_v31 = vpop.f32.mrb[50].mxu0 }
 0xa3b   : > { %v2728_v0 = vrot.slane %v2726_v42, 4  ;;  %v2683_v58 = vpop.f32.mrb[35].mxu1  ;;  %v2724_v17 = vpop.f32.mrb[51].mxu0 }
 0xa3c   : > { %v2734_v10 = vrot.slane %v2727_v51, 4 }
 0xa3d   : > { %v2729_v27 = vadd.f32 %v2728_v0, %v2726_v42 }
 0xa3e   : > { %v2735_v18 = vadd.f32 %v2734_v10, %v2727_v51 }
 0xa3f   : > { %v2730_v33 = vrot.slane %v2729_v27, 2 }
 0xa40   : > { %v2736_v37 = vrot.slane %v2735_v18, 2 }
 0xa41   : > { %v2731_v26 = vadd.f32 %v2730_v33, %v2729_v27 }
 0xa42   : > { %v2737_v32 = vadd.f32 %v2736_v37, %v2735_v18 }
 0xa43   : > { %v2732_v6 = vrot.slane %v2731_v26, 1 }
 0xa44   : > { %v2738_v45 = vrot.slane %v2737_v32, 1 }
 0xa45   : > { %v2733_v43 = vadd.f32 %v2732_v6, %v2731_v26 }
 0xa46   : > { %v2739_v5 = vadd.f32 %v2738_v45, %v2737_v32 }
 0xa48   : > { %v2742_v57 = vcombine.low %v2733_v43, %v2739_v5 }
 0xa4a   : > { %v2749_v49 = vrot.slane %v2742_v57, %v3833_v19 }
 0xa4c   : > { %v2756_v38 = vrot.slane %v2749_v49, %v3833_v19 }
 0xa4e   : > { %2762 = vst.msk [vmem:[%s326_s20] sm:$0x3] %vm2760_vm4, %v2756_v38 }
 0xa4f   : > { %3544 = shalt.err (!%p3541_p4)
}
 0xa50   : > { %s3545_s16 = scalar_lea.hbm %s4399_s21, 32  ;;  %s3549_s15 = scalar_lea.hbm %s4450_s7, 64 }
 0xa51   : > { %p3546_p5 = scmp.ne.s32.totalorder %s4399_s21, %s3545_s16  ;;  %p3550_p1 = scmp.lt.u32.totalorder %s4399_s21, %s4450_s7 }
 0xa52   : > { %p3551_p3 = scmp.lt.u32.totalorder %s3549_s15, %s3545_s16  ;;  %p3553_p6 = scmp.lt.u32.totalorder %s3545_s16, %s4399_s21 }
 0xa53   : > { %p3547_p7 = pnand %p3546_p5, %p4459_p12 }
 0xa54   : > { %p3552_p11 = por %p3551_p3, %p3550_p1 }
 0xa55   : > { %p3548_p9 = pneg %p3547_p7 }
 0xa56   : > { %p3554_p13 = por %p3553_p6, %p3552_p11 }
 0xa58   : > { %p3555_p8 = pnand %p3554_p13, %p3548_p9 }
 0xa5a   : > { %3558 = shalt.err (!%p3555_p8)
}
 0xa5b   : > { %3197 = dma.vmem_to_hbm [thread:$0]  (%p4459_p12), %s4401_s22, 32, %s4399_s21, %s2764_s28  }
 0xa5c PF: > { %s2790_s29 = sand.u32 1, %s3585_s24   ;;  %p4460_p10 = scmp.ne.s32.totalorder %s4456_s14, 0 }
 0xa5d   : > { %p4461_p0 = scmp.ge.s32.totalorder %s3597_s27, 2  ;;  %s2791_s19 = scalar_lea.sflag [#allocation4], %s2790_s29 }
 0xa5f   : > { %p3204_p2 = pnand %p4461_p0, %p4460_p10 }
 0xa61   : > { %3580 = dma.done.wait (!%p3204_p2), %s2791_s19, 32  }
 0xa62   : > { %3582 = vsyncadd (!%p3204_p2), %s2791_s19, 4294967264  ;;  %p20_p4 = scmp.ge.s32.totalorder %s3676_s30, 4   ;;  %s4462_s24 = smov %s3589_s25 }
 0xa63   : > { %s4463_s25 = smov %s3593_s26  ;;  %s4464_s26 = smov %s3688_s10 }
 0xa64   : > { %s4465_s27 = smov %s3676_s30  ;;  %22 = sbr.rel (!%p20_p4) target bundleno = 5 (0x5), region = 99 }
 0xa6b   :  { %2796 = vsyncpa [#allocation3], 1 }
 0xa6c   :  { %2798 = vsyncpa [#allocation3 + $0x1], 1 }
 0xa6d   :  { %2799 = vsyncpa [#allocation4], 1 }
 0xa6e   :  { %2801 = vsyncpa [#allocation4 + $0x1], 1 }

</bundles_post_ra>
